<compile_context>
chip_gen: v7x
topology: tpu7x:2x2x1
jax: 0.10.0
libtpu: 0.0.40
codegen_flags: <defaults>
</compile_context>

<pallas_src>
import jax
import jax.numpy as jnp
from jax.experimental import pallas as pl
from jax.experimental.pallas import tpu as pltpu

# TODO(synk): `self.features` is an externally-supplied nn.Sequential; it is not defined
# in this module, so the kernel consumes its output (B, 512, 4, 4) directly.

FEAT_DIM = 8192            # QLinear(8192, 1024)
HIDDEN = 1024
NUM_CLASSES = 10           # CIFAR-10
TK = 2048                  # K-tile for the FC1 reduction (4 steps over 8192)
N_SPLIT = 2                # hidden-dim split -> parallel grid axis (2 TCs on v7x)
HIDDEN_BLK = HIDDEN // N_SPLIT


def _classifier_kernel(x_ref, w1_ref, b1_ref, w2_ref, o_ref, acc_ref):
    """Per hidden-half: FC1 (tiled over K) + bias + ReLU + partial FC2."""
    k = pl.program_id(1)

    @pl.when(k == 0)
    def _():
        acc_ref[...] = jnp.zeros_like(acc_ref)

    # x is resident in VMEM (only 32 KiB as bf16); slice the K-slab in-kernel.
    start = pl.multiple_of(k * TK, TK)
    x_blk = x_ref[:, pl.ds(start, TK)]                       # (B, TK) bf16
    acc_ref[...] += jnp.dot(                                 # (B, HIDDEN_BLK) f32 acc
        x_blk, w1_ref[...], preferred_element_type=jnp.float32
    )

    @pl.when(k == pl.num_programs(1) - 1)
    def _():
        h = jnp.maximum(acc_ref[...] + b1_ref[...], 0.0)      # bias + ReLU (this half)
        # Partial FC2 contribution of this hidden half (W2 rows split accordingly).
        out = jnp.dot(h, w2_ref[...], preferred_element_type=jnp.float32)
        o_ref[...] = out[None].astype(o_ref.dtype)


def cifar_classifier(x_flat, w1, b1, w2, b2):
    """x_flat: (B, 8192) -> logits (B, num_classes) float32."""
    B, K = x_flat.shape
    assert K == FEAT_DIM
    assert K % TK == 0
    n_k = K // TK

    # Halve HBM traffic for the dominant streams; MXU takes bf16 natively, acc in f32.
    x_bf16 = x_flat.astype(jnp.bfloat16)
    w1_bf16 = w1.astype(jnp.bfloat16)

    grid_spec = pltpu.PrefetchScalarGridSpec(
        num_scalar_prefetch=0,
        grid=(N_SPLIT, n_k),  # (parallel hidden-half, arbitrary K reduction)
        in_specs=[
            pl.BlockSpec((B, FEAT_DIM), lambda n, k: (0, 0)),            # x resident
            pl.BlockSpec((TK, HIDDEN_BLK), lambda n, k: (k, n)),         # W1 K-slab / N-half
            pl.BlockSpec((1, HIDDEN_BLK), lambda n, k: (0, n)),          # b1 half (resident)
            pl.BlockSpec((HIDDEN_BLK, NUM_CLASSES), lambda n, k: (n, 0)),  # W2 rows (resident)
        ],
        out_specs=pl.BlockSpec((1, B, NUM_CLASSES), lambda n, k: (n, 0, 0)),
        scratch_shapes=[pltpu.VMEM((B, HIDDEN_BLK), jnp.float32)],
    )

    flops = 2 * B * FEAT_DIM * HIDDEN + 2 * B * HIDDEN * NUM_CLASSES
    bytes_accessed = (
        w1_bf16.size * 2 + x_bf16.size * 2 + b1.size * 4 + w2.size * 4
        + N_SPLIT * B * NUM_CLASSES * 4
    )

    partial = pl.pallas_call(
        _classifier_kernel,
        out_shape=jax.ShapeDtypeStruct((N_SPLIT, B, NUM_CLASSES), jnp.float32),
        grid_spec=grid_spec,
        compiler_params=pltpu.CompilerParams(
            # hidden halves are independent (megacore on v7x); K is a reduction.
            dimension_semantics=("parallel", "arbitrary"),
        ),
        cost_estimate=pl.CostEstimate(
            flops=flops, transcendentals=0, bytes_accessed=bytes_accessed
        ),
    )(x_bf16, w1_bf16, b1, w2)

    # Sum the two hidden-half partial logits and add the FC2 bias (tiny op).
    return partial.sum(axis=0) + b2


def cifar_forward(x_nchw, params):
    """Forward pass of the CIFAR module (classifier part; `features` is external)."""
    B = x_nchw.shape[0]
    x_flat = x_nchw.reshape(B, -1)  # == torch x.view(x.size(0), -1) on contiguous NCHW
    return cifar_classifier(x_flat, params["w1"], params["b1"], params["w2"], params["b2"])


def init_params(key):
    k1, k2, k3, k4 = jax.random.split(key, 4)
    # Deterministic, Linear-style init (scaled uniform), stored as (in, out) for x @ W.
    bound1 = 1.0 / (FEAT_DIM ** 0.5)
    bound2 = 1.0 / (HIDDEN ** 0.5)
    w1 = jax.random.uniform(k1, (FEAT_DIM, HIDDEN), jnp.float32, -bound1, bound1)
    return {
        # W1 stored in bf16 (HBM-bound stream); biases and tiny W2 stay f32.
        "w1": w1.astype(jnp.bfloat16),
        "b1": jax.random.uniform(k2, (1, HIDDEN), jnp.float32, -bound1, bound1),
        "w2": jax.random.uniform(k3, (HIDDEN, NUM_CLASSES), jnp.float32, -bound2, bound2),
        "b2": jax.random.uniform(k4, (1, NUM_CLASSES), jnp.float32, -bound2, bound2),
    }


if __name__ == "__main__":
    key = jax.random.PRNGKey(0)
    k_params, k_x = jax.random.split(key)

    params = init_params(k_params)

    # Feature maps as produced by `self.features` for CIFAR: (B, C, H, W) = (2, 512, 4, 4),
    # flattening to the 8192 features the classifier expects.
    B, C, H, W = 2, 512, 4, 4
    x = jax.random.normal(k_x, (B, C, H, W), jnp.float32)

    logits = cifar_forward(x, params)
    logits = jax.block_until_ready(logits)

    # Sanity check against plain-JAX reference of the same math (same bf16-cast inputs,
    # f32 accumulation -> only accumulation-order differences vs the kernel).
    x_flat = x.reshape(B, -1)
    xf = x_flat.astype(jnp.bfloat16).astype(jnp.float32)
    w1f = params["w1"].astype(jnp.float32)
    h_ref = jnp.maximum(
        jnp.dot(xf, w1f, precision=jax.lax.Precision.HIGHEST) + params["b1"], 0.0
    )
    ref = (
        jnp.dot(h_ref, params["w2"], precision=jax.lax.Precision.HIGHEST)
        + params["b2"]
    )
    assert logits.shape == (B, NUM_CLASSES)
    assert jnp.allclose(logits, ref, atol=2e-3, rtol=2e-3)

    print("KERNEL_OK")
</pallas_src>

<mosaic_0001>
module attributes {stable_mosaic.version = 11 : i64} {
  func.func @_classifier_kernel(%arg0: i32, %arg1: i32, %arg2: memref<2x8192xbf16, #tpu.memory_space<vmem>>, %arg3: memref<2048x512xbf16, #tpu.memory_space<vmem>>, %arg4: memref<1x512xf32, #tpu.memory_space<vmem>>, %arg5: memref<512x10xf32, #tpu.memory_space<vmem>>, %arg6: memref<1x2x10xf32, #tpu.memory_space<vmem>>, %arg7: memref<2x512xf32, #tpu.memory_space<vmem>>) attributes {dimension_semantics = [#tpu.dimension_semantics<parallel>, #tpu.dimension_semantics<arbitrary>], iteration_bounds = array<i64: 2, 4>, scalar_prefetch = 0 : i64, scratch_operands = 1 : i64, tpu.core_type = #tpu.core_type<tc>, window_params = [{pipeline_mode = #tpu.pipeline_mode<synchronous>, transform_indices = @transform_0, window_bounds = array<i64: 2, 8192>}, {transform_indices = @transform_1, window_bounds = array<i64: 2048, 512>}, {transform_indices = @transform_2, window_bounds = array<i64: 1, 512>}, {transform_indices = @transform_3, window_bounds = array<i64: 512, 10>}, {transform_indices = @transform_4, window_bounds = array<i64: 1, 2, 10>}]} {
    %c0_i32 = arith.constant 0 : i32
    %0 = arith.cmpi eq, %arg1, %c0_i32 : i32
    %1 = arith.extui %0 : i1 to i32
    %c0_i32_0 = arith.constant 0 : i32
    %2 = arith.cmpi ne, %1, %c0_i32_0 : i32
    scf.if %2 {
      %cst_8 = arith.constant 0.000000e+00 : f32
      %15 = vector.broadcast %cst_8 : f32 to vector<2x512xf32>
      %c0_9 = arith.constant 0 : index
      %c0_10 = arith.constant 0 : index
      %16 = vector.load %arg7[%c0_9, %c0_10] : memref<2x512xf32, #tpu.memory_space<vmem>>, vector<2x512xf32>
      tpu.vector_store %arg7[%c0_9, %c0_10], %15 {strides = array<i32>} : memref<2x512xf32, #tpu.memory_space<vmem>>, vector<2x512xf32>,
    } else {
    }
    %c2048_i32 = arith.constant 2048 : i32
    %3 = arith.muli %arg1, %c2048_i32 : i32
    %4 = tpu.assume_multiple %3, 2048 : i32
    %c0 = arith.constant 0 : index
    %5 = arith.index_cast %4 : i32 to index
    %6 = vector.load %arg2[%c0, %5] : memref<2x8192xbf16, #tpu.memory_space<vmem>>, vector<2x2048xbf16>
    %c0_1 = arith.constant 0 : index
    %c0_2 = arith.constant 0 : index
    %7 = vector.load %arg7[%c0_1, %c0_2] : memref<2x512xf32, #tpu.memory_space<vmem>>, vector<2x512xf32>
    %c0_3 = arith.constant 0 : index
    %c0_4 = arith.constant 0 : index
    %8 = vector.load %arg3[%c0_3, %c0_4] : memref<2048x512xbf16, #tpu.memory_space<vmem>>, vector<2048x512xbf16>
    %cst = arith.constant dense<0.000000e+00> : vector<2x512xf32>
    %9 = tpu.matmul %6, %8, %cst {dimension_numbers = #tpu.dot_dimension_numbers<[1], [0], [0], [1], [0, 0, 1, 1], [], []>} : vector<2x2048xbf16>, vector<2048x512xbf16>, vector<2x512xf32> -> vector<2x512xf32>
    %10 = arith.addf %7, %9 : vector<2x512xf32>
    %c0_5 = arith.constant 0 : index
    %c0_6 = arith.constant 0 : index
    %11 = vector.load %arg7[%c0_5, %c0_6] : memref<2x512xf32, #tpu.memory_space<vmem>>, vector<2x512xf32>
    tpu.vector_store %arg7[%c0_5, %c0_6], %10 {strides = array<i32>} : memref<2x512xf32, #tpu.memory_space<vmem>>, vector<2x512xf32>,
    %c3_i32 = arith.constant 3 : i32
    %12 = arith.cmpi eq, %arg1, %c3_i32 : i32
    %13 = arith.extui %12 : i1 to i32
    %c0_i32_7 = arith.constant 0 : i32
    %14 = arith.cmpi ne, %13, %c0_i32_7 : i32
    scf.if %14 {
      %c0_8 = arith.constant 0 : index
      %c0_9 = arith.constant 0 : index
      %15 = vector.load %arg7[%c0_8, %c0_9] : memref<2x512xf32, #tpu.memory_space<vmem>>, vector<2x512xf32>
      %c0_10 = arith.constant 0 : index
      %c0_11 = arith.constant 0 : index
      %16 = vector.load %arg4[%c0_10, %c0_11] : memref<1x512xf32, #tpu.memory_space<vmem>>, vector<1x512xf32>
      %17 = vector.broadcast %16 : vector<1x512xf32> to vector<2x512xf32>
      %18 = arith.addf %15, %17 : vector<2x512xf32>
      %cst_12 = arith.constant 0.000000e+00 : f32
      %19 = vector.broadcast %cst_12 : f32 to vector<2x512xf32>
      %20 = arith.maximumf %18, %19 : vector<2x512xf32>
      %c0_13 = arith.constant 0 : index
      %c0_14 = arith.constant 0 : index
      %21 = vector.load %arg5[%c0_13, %c0_14] : memref<512x10xf32, #tpu.memory_space<vmem>>, vector<512x10xf32>
      %cst_15 = arith.constant dense<0.000000e+00> : vector<2x10xf32>
      %22 = tpu.matmul %20, %21, %cst_15 {dimension_numbers = #tpu.dot_dimension_numbers<[1], [0], [0], [1], [0, 0, 1, 1], [], []>} : vector<2x512xf32>, vector<512x10xf32>, vector<2x10xf32> -> vector<2x10xf32>
      %23 = vector.shape_cast %22 : vector<2x10xf32> to vector<1x2x10xf32>
      %c0_16 = arith.constant 0 : index
      %c0_17 = arith.constant 0 : index
      %c0_18 = arith.constant 0 : index
      %24 = vector.load %arg6[%c0_16, %c0_17, %c0_18] : memref<1x2x10xf32, #tpu.memory_space<vmem>>, vector<1x2x10xf32>
      tpu.vector_store %arg6[%c0_16, %c0_17, %c0_18], %23 {strides = array<i32>} : memref<1x2x10xf32, #tpu.memory_space<vmem>>, vector<1x2x10xf32>,
    } else {
    }
    return
  }
  func.func @transform_0(%arg0: i32, %arg1: i32) -> (i32, i32) {
    %c0_i32 = arith.constant 0 : i32
    %c0_i32_0 = arith.constant 0 : i32
    %c0_i32_1 = arith.constant 0 : i32
    return %c0_i32, %c0_i32_0 : i32, i32
  }
  func.func @transform_1(%arg0: i32, %arg1: i32) -> (i32, i32) {
    %c0_i32 = arith.constant 0 : i32
    return %arg1, %arg0 : i32, i32
  }
  func.func @transform_2(%arg0: i32, %arg1: i32) -> (i32, i32) {
    %c0_i32 = arith.constant 0 : i32
    %c0_i32_0 = arith.constant 0 : i32
    return %c0_i32, %arg0 : i32, i32
  }
  func.func @transform_3(%arg0: i32, %arg1: i32) -> (i32, i32) {
    %c0_i32 = arith.constant 0 : i32
    %c0_i32_0 = arith.constant 0 : i32
    return %arg0, %c0_i32 : i32, i32
  }
  func.func @transform_4(%arg0: i32, %arg1: i32) -> (i32, i32, i32) {
    %c0_i32 = arith.constant 0 : i32
    %c0_i32_0 = arith.constant 0 : i32
    %c0_i32_1 = arith.constant 0 : i32
    return %arg0, %c0_i32, %c0_i32_0 : i32, i32, i32
  }
}

</mosaic_0001>

<bundles_post_ra>
// kernel: tpu_custom_call.1
= control target key start
LH: loop header
LB: loop body
LE: loop exit
PB: predicated region body
PF: predicated region fallthrough
CT: control target
= control target key end

     0   :  { %s7514_s0 = inlined_call_operand.hbm [shape: bf16[2,8192], index: 0, kind: input, shape index: {}]   ;;  %s7515_s1 = inlined_call_operand.hbm [shape: bf16[8192,1024], index: 1, kind: input, shape index: {}]   ;;  %s7516_s2 = inlined_call_operand.hbm [shape: f32[1,1024], index: 2, kind: input, shape index: {}]   ;;  %s7517_s3 = inlined_call_operand.vmem [shape: f32[1024,10], index: 3, kind: input, shape index: {}]   ;;  %s7518_s4 = inlined_call_operand.hbm [shape: f32[2,2,10], index: 4, kind: output, shape index: {}]  }
   0x1   :  { %7530 = sst [smem:[#allocation18_spill]] %s7515_s1 }
   0x2   :  { %7531 = sst [smem:[#allocation19_spill]] %s7518_s4 }
   0x3   :  { %9 = vsyncpa [#allocation4], 0 }
   0x4   :  { %10 = vsyncpa [#allocation7], 0 }
   0x5   :  { %12 = vsyncpa [#allocation7 + $0x1], 0 }
   0x6   :  { %13 = vsyncpa [#allocation5], 0 }
   0x7   :  { %15 = vsyncpa [#allocation5 + $0x1], 0  ;;  %s6480_s15 = smov 0   ;;  %s6482_s16 = smov 0  }
   0x8   :  { %s6484_s17 = smov 0   ;;  %s6486_s18 = smov 0  }
   0x9   :  { %s6488_s19 = smov 0   ;;  %s6490_s20 = smov 0  }
   0xa   :  { %s6492_s21 = smov 0   ;;  %s6494_s22 = smov 0  }
   0xb   :  { %s6496_s23 = smov 0   ;;  %s6498_s24 = smov 0  }
   0xc   :  { %s6500_s25 = smov 0  }
   0xd LB: > { %7532 = sst [smem:[#allocation14_spill]] %s6427_s21  ;;  %s30_s26 = sadd.s32 1, %s6435_s23  ;;  %s6443_s25 = sphi %s6500_s25, %s21_s25   ;;  %s6439_s24 = sphi %s6498_s24, %s7570_s24   ;;  %s6435_s23 = sphi %s6496_s23, %s7561_s23   ;;  %s6431_s22 = sphi %s6494_s22, %s7569_s22   ;;  %s6427_s21 = sphi %s6492_s21, %s7560_s21   ;;  %s6423_s20 = sphi %s6490_s20, %s7568_s20   ;;  %s6419_s19 = sphi %s6488_s19, %s7567_s19   ;;  %s6415_s18 = sphi %s6486_s18, %s7566_s18   ;;  %s6411_s17 = sphi %s6484_s17, %s7565_s17   ;;  %s6407_s16 = sphi %s6482_s16, %s7564_s16   ;;  %s6403_s15 = sphi %s6480_s15, %s7563_s15  }
   0xe   : > { %7533 = sst [smem:[#allocation15_spill]] %s6435_s23  ;;  %s33_s27 = sadd.s32 1, %s6439_s24 }
   0xf   : > { %p31_p0 = scmp.ge.s32.totalorder %s30_s26, 4  ;;  %s63_s28 = sadd.s32 1, %s6423_s20 }
  0x10   : > { %p70_p1 = scmp.ne.s32.totalorder %s6423_s20, %s6419_s19  ;;  %p71_p2 = scmp.eq.s32.totalorder %s6443_s25, 0 }
  0x11   : > { %s7572_s26 = smov (%p31_p0, %s30_s26), 0  ;;  %s7574_s27 = smov (!%p31_p0, %s33_s27), %s6439_s24 }
  0x12   : > { %7534 = sst [smem:[#allocation16_spill]] %s7572_s26  ;;  %s58_s29 = ssub.s32 %s6435_s23, %s7572_s26 }
  0x13   : > { %p6548_p3 = por %p71_p2, %p70_p1  ;;  %p35_p4 = scmp.ge.s32.totalorder %s7574_s27, 2 }
  0x14   : > { %p7523_p5 = scmp.lt.s32.totalorder %s6443_s25, 8  ;;  %s189_s5 = sand.u32 1, %s6443_s25  }
  0x15   : > { %s7576_s27 = smov (%p35_p4, %s7574_s27), 0  ;;  %s191_s6 = sand.u32 1, %s6423_s20  }
  0x16   : > { %7536 = sst [smem:[#allocation17_spill]] %s7576_s27  ;;  %s6559_s7 = ssub.s32 %s6439_s24, %s7576_s27 }
  0x17   : > { %s4605_s8 = sshll.u32 %s191_s6, 12  ;;  %s60_s9 = sor.u32 %s6559_s7, %s58_s29 }
  0x18   : > { %p61_p6 = scmp.eq.s32.totalorder %s60_s9, 0  ;;  %s4607_s10 = sshll.u32 %s6439_s24, 2 }
  0x19   : > { %s5139_s11 = sshll.u32 %s6435_s23, 11  ;;  %s193_s12 = scalar_lea.vmem [#allocation6], %s4605_s8 }
  0x1a   : > { %s203_s13 = sshll.u32 %s193_s12, 4  ;;  %s200_s26 = sadd.s32 %s5139_s11, %s4607_s10  ;;  %s6567_s13 = int_to_ptr.vmem [resolvable:$true] %s203_s13 }
  0x1b   : > { %s6565_s14 = scalar_select %p61_p6, %s6423_s20, %s63_s28  }
  0x1c   : > { %s4609_s4 = sshll.u32 %s200_s26, 6  ;;  %p6573_p7 = pnand %p7523_p5, %p6548_p3 }
  0x1d   : > { %s7538_s1 = sld [smem:[#allocation18_spill]]  ;;  %s6582_s28 = scalar_lea.sflag [#allocation7], %s189_s5 }
  0x1e   : > { %p6227_p9 = pneg %p6573_p7 }
  0x23   : > { %s6580_s29 = scalar_lea.hbm %s7538_s1, %s4609_s4  ;;  %s6230_s8 = scalar_lea.hbm %s7538_s1, 524288 }
  0x24   : > { %s6225_s26 = scalar_lea.hbm %s6580_s29, 65536  ;;  %p6231_p12 = scmp.lt.u32.totalorder %s6580_s29, %s7538_s1 }
  0x25   : > { %p6226_p8 = scmp.ne.s32.totalorder %s6580_s29, %s6225_s26  ;;  %p6232_p13 = scmp.lt.u32.totalorder %s6230_s8, %s6225_s26 }
  0x26   : > { %p6234_p1 = scmp.lt.u32.totalorder %s6225_s26, %s6580_s29 }
  0x27   : > { %p6228_p10 = pnand %p6227_p9, %p6226_p8  ;;  %p6233_p0 = por %p6232_p13, %p6231_p12 }
  0x29   : > { %p6229_p11 = pneg %p6228_p10  ;;  %p6235_p3 = por %p6234_p1, %p6233_p0 }
  0x2b   : > { %p6236_p4 = pnand %p6235_p3, %p6229_p11 }
  0x2d   : > { %6239 = shalt.err (!%p6236_p4)
}
  0x2e   : > { %s6240_s5 = scalar_lea.vmem %s6567_s13, 65536  ;;  %s6445_s10 = smov [#allocation6]  }
  0x2f   : > { %p6241_p6 = scmp.ne.s32.totalorder %s6567_s13, %s6240_s5  ;;  %s6245_s11 = sshll.u32 %s6445_s10, 4  ;;  %s6246_s11 = int_to_ptr.vmem [resolvable:$false] %s6245_s11 }
  0x30   : > { %s6247_s12 = scalar_lea.vmem %s6246_s11, 131072  ;;  %p6248_p5 = scmp.lt.s32.totalorder %s6567_s13, %s6246_s11 }
  0x31   : > { %p6243_p8 = pnand %p6241_p6, %p6227_p9  ;;  %p6249_p12 = scmp.lt.s32.totalorder %s6247_s12, %s6240_s5 }
  0x33   : > { %p6244_p10 = pneg %p6243_p8  ;;  %p6250_p13 = por %p6249_p12, %p6248_p5 }
  0x35   : > { %p6251_p0 = pnand %p6250_p13, %p6244_p10 }
  0x37   : > { %6254 = shalt.err (!%p6251_p0)
}
  0x38   : > { %s6446_s6 = smov 512   ;;  %s6447_s26 = smov 256  }
  0x39   : > { %s6448_s30 = smov 16   ;;  %s6611_s27 = sadd.s32 4294967295, %s6443_s25  }
  0x3a   : > { %5348 = dma.hbm_to_vmem [thread:$0]  (!%p6573_p7), %s6580_s29, 65536, %s6567_s13, %s6582_s28, %s6446_s6, %s6447_s26, %s6448_s30  }
  0x3b   : > { %s4601_s8 = sadd.s32 4294967294, %s6443_s25   ;;  %p76_p5 = scmp.ne.s32.totalorder %s6419_s19, %s6415_s18 }
  0x3c   : > { %p7524_p9 = scmp.eq.s32.totalorder %s6611_s27, 0  ;;  %p102_p11 = scmp.ne.s32.totalorder %s6407_s16, %s6403_s15 }
  0x3d   : > { %p158_p3 = scmp.eq.s32.totalorder %s4601_s8, 7  ;;  %p4602_p8 = scmp.ge.s32.totalorder %s6443_s25, 1 }
  0x3e   : > { %p6622_p7 = por %p7524_p9, %p76_p5  ;;  %p6628_p4 = por %p102_p11, %p7524_p9 }
  0x3f   : > { %p6632_p6 = por %p158_p3, %p102_p11  ;;  %p165_p10 = scmp.lt.s32.totalorder %s6443_s25, 9 }
  0x40   : > { %s7539_s21 = scalar_select %p6622_p7, 1, 0 }
  0x41   : > { %s7540_s18 = scalar_select %p6628_p4, 1, 0 }
  0x42   : > { %s7541_s13 = scalar_select %p6632_p6, 1, 0 }
  0x43   : > { %p6638_p12 = pnand %p4602_p8, %p165_p10  ;;  %s6449_s4 = smov [#allocation3]  }
  0x44   : > { %s178_s9 = sshll.u32 %s6449_s4, 4  ;;  %p87_p0 = scmp.eq.s32.totalorder %s6559_s7, 0  ;;  %s179_s9 = int_to_ptr.vmem [resolvable:$true] %s178_s9 }
  0x45   : > { %s7542_s29 = scalar_select %p6638_p12, 1, 0 }
  0x46   : > { %p5341_p13 = pneg %p6638_p12  ;;  %s89_s5 = sadd.s32 1, %s6411_s17 }
  0x47   : > { %p7526_p5 = scmp.ne.s32.totalorder %s6411_s17, %s6407_s16  ;;  %s215_s11 = sand.u32 1, %s6411_s17  }
  0x48   : > { %p6650_p11 = pnand %p5341_p13, %p7524_p9  ;;  %s6255_s7 = scalar_lea.hbm %s7514_s0, 1024 }
  0x49   : > { %s6656_s12 = scalar_select %p87_p0, %s6411_s17, %s89_s5  }
  0x4a   : > { %p6663_p3 = por %p7526_p5, %p71_p2  ;;  %p6256_p8 = scmp.ne.s32.totalorder %s7514_s0, %s6255_s7 }
  0x4b   : > { %p6257_p10 = pneg %p6650_p11  ;;  %p6262_p0 = scmp.lt.u32.totalorder %s6255_s7, %s7514_s0 }
  0x4c   : > { %s7544_s6 = scalar_select %p6663_p3, 1, 0 }
  0x4d   : > { %p6258_p13 = pnand %p6257_p10, %p6256_p8 }
  0x4f   : > { %p6259_p9 = pneg %p6258_p13 }
  0x51   : > { %p6264_p2 = pnand %p6262_p0, %p6259_p9 }
  0x53   : > { %6267 = shalt.err (!%p6264_p2)
}
  0x54   : > { %s6268_s23 = scalar_lea.vmem %s179_s9, 1024  ;;  %p6276_p4 = scmp.lt.s32.totalorder %s179_s9, %s179_s9 }
  0x55   : > { %p6269_p1 = scmp.ne.s32.totalorder %s179_s9, %s6268_s23  ;;  %p6277_p7 = scmp.lt.s32.totalorder %s6268_s23, %s6268_s23 }
  0x57   : > { %p6271_p5 = pnand %p6269_p1, %p6257_p10  ;;  %p6278_p12 = por %p6277_p7, %p6276_p4 }
  0x59   : > { %p6272_p6 = pneg %p6271_p5 }
  0x5b   : > { %p6279_p3 = pnand %p6278_p12, %p6272_p6 }
  0x5d   : > { %6282 = shalt.err (!%p6279_p3)
}
  0x5e   : > { %5344 = dma.hbm_to_vmem [thread:$0]  (!%p6650_p11), %s7514_s0, 1024, %s179_s9, [#allocation4]  }
  0x5f   : > { %p7545_p9 = scmp.ne.s32.totalorder %s6411_s17, %s6407_s16  ;;  %p7546_p1 = scmp.eq.s32.totalorder %s6611_s27, 7 }
  0x60   : > { %s4610_s23 = sshll.u32 %s215_s11, 2  ;;  %s5140_s7 = sshll.u32 %s6439_s24, 6 }
  0x61   : > { %p6688_p5 = por %p7546_p1, %p7545_p9  ;;  %s6696_s4 = scalar_lea.hbm %s7516_s2, %s5140_s7 }
  0x62   : > { %s217_s5 = scalar_lea.vmem [#allocation8], %s4610_s23  ;;  %p7548_p7 = scmp.ne.s32.totalorder %s7544_s6, 0 }
  0x63   : > { %s225_s26 = sshll.u32 %s217_s5, 4  ;;  %p7549_p4 = scmp.lt.s32.totalorder %s6443_s25, 8  ;;  %s6698_s26 = int_to_ptr.vmem [resolvable:$true] %s225_s26 }
  0x64   : > { %s6283_s11 = scalar_lea.hbm %s6696_s4, 64  ;;  %s6288_s7 = scalar_lea.hbm %s7516_s2, 128 }
  0x65   : > { %p6704_p6 = pnand %p7549_p4, %p7548_p7  ;;  %p6284_p12 = scmp.ne.s32.totalorder %s6696_s4, %s6283_s11 }
  0x66   : > { %p6289_p10 = scmp.lt.u32.totalorder %s6696_s4, %s7516_s2  ;;  %p6290_p13 = scmp.lt.u32.totalorder %s6288_s7, %s6283_s11 }
  0x67   : > { %p6285_p11 = pneg %p6704_p6  ;;  %p6292_p2 = scmp.lt.u32.totalorder %s6283_s11, %s6696_s4 }
  0x68   : > { %p6291_p0 = por %p6290_p13, %p6289_p10 }
  0x69   : > { %p6286_p3 = pnand %p6285_p11, %p6284_p12 }
  0x6a   : > { %p6293_p9 = por %p6292_p2, %p6291_p0 }
  0x6b   : > { %p6287_p8 = pneg %p6286_p3 }
  0x6d   : > { %p6294_p1 = pnand %p6293_p9, %p6287_p8 }
  0x6f   : > { %6297 = shalt.err (!%p6294_p1)
}
  0x70   : > { %s6298_s10 = scalar_lea.vmem %s6698_s26, 64  ;;  %s6450_s5 = smov [#allocation8]  }
  0x71   : > { %p6299_p7 = scmp.ne.s32.totalorder %s6698_s26, %s6298_s10  ;;  %s6303_s30 = sshll.u32 %s6450_s5, 4  ;;  %s6304_s30 = int_to_ptr.vmem [resolvable:$false] %s6303_s30 }
  0x72   : > { %s6305_s23 = scalar_lea.vmem %s6304_s30, 128  ;;  %p6306_p3 = scmp.lt.s32.totalorder %s6698_s26, %s6304_s30 }
  0x73   : > { %p6301_p4 = pnand %p6299_p7, %p6285_p11  ;;  %p6307_p10 = scmp.lt.s32.totalorder %s6305_s23, %s6298_s10 }
  0x75   : > { %p6302_p12 = pneg %p6301_p4  ;;  %p6308_p13 = por %p6307_p10, %p6306_p3 }
  0x77   : > { %p6309_p0 = pnand %p6308_p13, %p6302_p12 }
  0x79   : > { %6312 = shalt.err (!%p6309_p0)
}
  0x7a   : > { %5351 = dma.hbm_to_vmem [thread:$0]  (!%p6704_p6), %s6696_s4, 64, %s6698_s26, %s6582_s28  }
  0x7b   : > { %p7551_p8 = scmp.ne.s32.totalorder %s7542_s29, 0 }
  0x7c   : > { %p7552_p11 = scmp.eq.s32.totalorder (!%p7551_p8), %s6611_s27, 0 }
  0x7d   : > { %243 = sbr.rel (%p7551_p8) target bundleno = 1154 (0x482), region = 36 }
  0x84   : > { %6386 = dma.done.wait (%p7552_p11), [#allocation4], 1024   ;;  %p7553_p2 = pmov %p7552_p11 }
  0x85   : > { %s249_s11 = sand.u32 1, %s6611_s27   ;;  %s251_s7 = sand.u32 1, %s6419_s19  }
  0x86   : > { %6388 = vsyncadd (%p7553_p2), [#allocation4], 4294966272  ;;  %s4615_s6 = sshll.u32 %s251_s7, 12  ;;  %s250_s9 = scalar_lea.sflag [#allocation7], %s249_s11 }
  0x87   : > { %s6742_s8 = scalar_lea.vmem [#allocation6], %s4615_s6  ;;  %p7554_p9 = scmp.ne.s32.totalorder %s7539_s21, 0 }
  0x89   : > { %6390 = dma.done.wait (%p7554_p9), %s250_s9, 65536  }
  0x8a   : > { %6392 = vsyncadd (%p7554_p9), %s250_s9, 4294901760  ;;  %s6749_s28 = sand.u32 1, %s6407_s16   ;;  %p7555_p6 = scmp.ne.s32.totalorder %s7540_s18, 0 }
  0x8b   : > { %s4616_s29 = sshll.u32 %s6749_s28, 2 }
  0x8c   : > { %s6752_s4 = scalar_lea.vmem [#allocation8], %s4616_s29 }
  0x8d   : > { %6394 = dma.done.wait (%p7555_p6), %s250_s9, 64  }
  0x8e   : > { %6396 = vsyncadd (%p7555_p6), %s250_s9, 4294967232  ;;  %s4617_s27 = sshll.u32 %s6749_s28, 1  ;;  %s4618_s26 = sshll.u32 %s6431_s22, 6 }
  0x8f   : > { %p301_p1 = scmp.lt.s32.totalorder %s4618_s26, 127  ;;  %s6765_s23 = scalar_lea.vmem [#allocation9], %s4617_s27 }
  0x90   : > { %s7556_s11 = sld [smem:[#allocation14_spill]] }
  0x91   : > { %s7578_s26 = smov (!%p301_p1, %s4618_s26), 127 }
  0x92   : > { %s4619_s21 = sshll.u32 %s7578_s26, 3 }
  0x93   : > { %s6763_s30 = scalar_lea.vmem %s7517_s3, %s4619_s21 }
  0x96   : > { %p4620_p7 = scmp.ne.s32.totalorder %s7556_s11, 0 }
  0x97   : > { %v6451_v0 = vmov (!%p4620_p7), 0.0  }
  0x98   : > { %309 = sbr.rel (%p4620_p7) target bundleno = 159 (0x9f), region = 52  ;;  %310 = vst [vmem:[#allocation2] sm:$0xff] (!%p4620_p7), %v6451_v0 }
  0x9f PF: > { %v5455_v1 = vld [vmem:[%s6742_s8 + $0x4] ss:$16 sps:$4 sm:$0xff]   ;;  %v5457_v2 = vld [vmem:[%s6742_s8 + $0xc] ss:$16 sps:$4 sm:$0xff]   ;;  %v5459_v3 = vld [vmem:[%s6742_s8] ss:$16 sps:$4 sm:$0xff]   ;;  %v836_v39 = vlaneseq }
  0xa0   : > { %3506 = vmatprep.subr.bf16.mxu0 %v5455_v1  ;;  %v5460_v4 = vld [vmem:[%s6742_s8 + $0x8] ss:$16 sps:$4 sm:$0xff]   ;;  %3834 = vmatprep.subr.bf16.mxu1 %v5457_v2  ;;  %v5461_v5 = vld [vmem:[%s6742_s8 + $0x24] ss:$16 sps:$4 sm:$0xff]   ;;  %v5463_v6 = vld [vmem:[%s6742_s8 + $0x2c] ss:$16 sps:$4 sm:$0xff]  }
  0xa1   : > { %3507 = vmatpush1.bf16.msra.mxu0 %v5459_v3  ;;  %3835 = vmatpush1.bf16.msra.mxu1 %v5460_v4  ;;  %v5465_v7 = vld [vmem:[%s6742_s8 + $0x20] ss:$16 sps:$4 sm:$0xff]   ;;  %v5466_v8 = vld [vmem:[%s6742_s8 + $0x28] ss:$16 sps:$4 sm:$0xff]   ;;  %v5467_v9 = vld [vmem:[%s6742_s8 + $0x44] ss:$16 sps:$4 sm:$0xff]  }
  0xa2   : > { %3508 = vmatprep.subr.bf16.mxu0 %v5461_v5  ;;  %3836 = vmatprep.subr.bf16.mxu1 %v5463_v6  ;;  %v5469_v10 = vld [vmem:[%s6742_s8 + $0x4c] ss:$16 sps:$4 sm:$0xff]   ;;  %v5471_v11 = vld [vmem:[%s6742_s8 + $0x40] ss:$16 sps:$4 sm:$0xff]   ;;  %v5472_v12 = vld [vmem:[%s6742_s8 + $0x48] ss:$16 sps:$4 sm:$0xff]  }
  0xa3   : > { %v5473_v13 = vld [vmem:[%s6742_s8 + $0x64] ss:$16 sps:$4 sm:$0xff]   ;;  %v5475_v14 = vld [vmem:[%s6742_s8 + $0x6c] ss:$16 sps:$4 sm:$0xff]   ;;  %v5477_v15 = vld [vmem:[%s6742_s8 + $0x60] ss:$16 sps:$4 sm:$0xff]  }
  0xa4   : > { %v5478_v16 = vld [vmem:[%s6742_s8 + $0x68] ss:$16 sps:$4 sm:$0xff]   ;;  %v5479_v17 = vld [vmem:[%s6742_s8 + $0x84] ss:$16 sps:$4 sm:$0xff]   ;;  %v5481_v18 = vld [vmem:[%s6742_s8 + $0x8c] ss:$16 sps:$4 sm:$0xff]  }
  0xa5   : > { %3509 = vmatpush1.bf16.msra.mxu0 %v5465_v7  ;;  %3837 = vmatpush1.bf16.msra.mxu1 %v5466_v8  ;;  %v5483_v19 = vld [vmem:[%s6742_s8 + $0x80] ss:$16 sps:$4 sm:$0xff]   ;;  %v5484_v20 = vld [vmem:[%s6742_s8 + $0x88] ss:$16 sps:$4 sm:$0xff]   ;;  %v5485_v21 = vld [vmem:[%s6742_s8 + $0xa4] ss:$16 sps:$4 sm:$0xff]  }
  0xa6   : > { %3510 = vmatprep.subr.bf16.mxu0 %v5467_v9  ;;  %3838 = vmatprep.subr.bf16.mxu1 %v5469_v10  ;;  %v5487_v22 = vld [vmem:[%s6742_s8 + $0xac] ss:$16 sps:$4 sm:$0xff]   ;;  %v5489_v23 = vld [vmem:[%s6742_s8 + $0xa0] ss:$16 sps:$4 sm:$0xff]   ;;  %v5490_v24 = vld [vmem:[%s6742_s8 + $0xa8] ss:$16 sps:$4 sm:$0xff]  }
  0xa7   : > { %v5491_v25 = vld [vmem:[%s6742_s8 + $0xc4] ss:$16 sps:$4 sm:$0xff]   ;;  %v5493_v26 = vld [vmem:[%s6742_s8 + $0xcc] ss:$16 sps:$4 sm:$0xff]   ;;  %v5495_v27 = vld [vmem:[%s6742_s8 + $0xc0] ss:$16 sps:$4 sm:$0xff]  }
  0xa8   : > { %v5496_v28 = vld [vmem:[%s6742_s8 + $0xc8] ss:$16 sps:$4 sm:$0xff]   ;;  %v5497_v29 = vld [vmem:[%s6742_s8 + $0xe4] ss:$16 sps:$4 sm:$0xff]   ;;  %v5499_v30 = vld [vmem:[%s6742_s8 + $0xec] ss:$16 sps:$4 sm:$0xff]  }
  0xa9   : > { %3511 = vmatpush1.bf16.msra.mxu0 %v5471_v11  ;;  %3839 = vmatpush1.bf16.msra.mxu1 %v5472_v12  ;;  %v5501_v31 = vld [vmem:[%s6742_s8 + $0xe0] ss:$16 sps:$4 sm:$0xff]   ;;  %v5502_v32 = vld [vmem:[%s6742_s8 + $0xe8] ss:$16 sps:$4 sm:$0xff]   ;;  %s7557_s18 = sld [smem:[#allocation14_spill]]  ;;  %v6808_v44 = vshrl.u32 %v836_v39, 7 }
  0xaa   : > { %3512 = vmatprep.subr.bf16.mxu0 %v5473_v13  ;;  %3840 = vmatprep.subr.bf16.mxu1 %v5475_v14  ;;  %v5503_v33 = vld [vmem:[%s6742_s8 + $0x104] ss:$16 sps:$4 sm:$0xff]   ;;  %v5505_v34 = vld [vmem:[%s6742_s8 + $0x10c] ss:$16 sps:$4 sm:$0xff]   ;;  %v5507_v35 = vld [vmem:[%s6742_s8 + $0x100] ss:$16 sps:$4 sm:$0xff]  }
  0xab   : > { %v5508_v36 = vld [vmem:[%s6742_s8 + $0x108] ss:$16 sps:$4 sm:$0xff]   ;;  %v6452_v37 = vmov 1966171168   ;;  %v5509_v40 = vld [vmem:[%s6742_s8 + $0x124] ss:$16 sps:$4 sm:$0xff]  }
  0xac   : > { %v834_v38 = vunpack.c.l.s4 %v6452_v37  ;;  %v5511_v41 = vld [vmem:[%s6742_s8 + $0x12c] ss:$16 sps:$4 sm:$0xff]   ;;  %v5513_v42 = vld [vmem:[%s6742_s8 + $0x120] ss:$16 sps:$4 sm:$0xff]   ;;  %v5514_v45 = vld [vmem:[%s6742_s8 + $0x128] ss:$16 sps:$4 sm:$0xff]  }
  0xad   : > { %3513 = vmatpush1.bf16.msra.mxu0 %v5477_v15  ;;  %3841 = vmatpush1.bf16.msra.mxu1 %v5478_v16  ;;  %v5515_v46 = vld [vmem:[%s6742_s8 + $0x144] ss:$16 sps:$4 sm:$0xff]   ;;  %v5517_v47 = vld [vmem:[%s6742_s8 + $0x14c] ss:$16 sps:$4 sm:$0xff]   ;;  %v5519_v48 = vld [vmem:[%s6742_s8 + $0x140] ss:$16 sps:$4 sm:$0xff]  }
  0xae   : > { %3514 = vmatprep.subr.bf16.mxu0 %v5479_v17  ;;  %3842 = vmatprep.subr.bf16.mxu1 %v5481_v18  ;;  %v835_v43 = vunpack.c.0.s8 %v834_v38  ;;  %v5520_v49 = vld [vmem:[%s6742_s8 + $0x148] ss:$16 sps:$4 sm:$0xff]   ;;  %v5521_v51 = vld [vmem:[%s6742_s8 + $0x164] ss:$16 sps:$4 sm:$0xff]   ;;  %v5523_v52 = vld [vmem:[%s6742_s8 + $0x16c] ss:$16 sps:$4 sm:$0xff]  }
  0xaf   : > { %s4621_s7 = sshll.u32 %s7557_s18, 11  ;;  %v5525_v54 = vld [vmem:[%s6742_s8 + $0x160] ss:$16 sps:$4 sm:$0xff]   ;;  %v5526_v56 = vld [vmem:[%s6742_s8 + $0x168] ss:$16 sps:$4 sm:$0xff]   ;;  %p5134_p4 = scmp.ne.s32.totalorder %s7557_s18, 3 }
  0xb0   : > { %s6812_s6 = sshra.s32 %s4621_s7, 7  ;;  %v6818_v50 = vsub.s32 %v835_v43, %v6808_v44  ;;  %v5527_v57 = vld [vmem:[%s6742_s8 + $0x184] ss:$16 sps:$4 sm:$0xff]   ;;  %v5529_v58 = vld [vmem:[%s6742_s8 + $0x18c] ss:$16 sps:$4 sm:$0xff]   ;;  %vm4455_vm0 = vcmask (!%p5134_p4), 74752  }
  0xb1   : > { %3515 = vmatpush1.bf16.msra.mxu0 %v5483_v19  ;;  %3843 = vmatpush1.bf16.msra.mxu1 %v5484_v20  ;;  %s314_s9 = scalar_lea.vmem [#allocation3], %s6812_s6  ;;  %v5531_v60 = vld [vmem:[%s6742_s8 + $0x180] ss:$16 sps:$4 sm:$0xff]   ;;  %v5532_v62 = vld [vmem:[%s6742_s8 + $0x188] ss:$16 sps:$4 sm:$0xff]  }
  0xb2   : > { %3516 = vmatprep.subr.bf16.mxu0 %v5485_v21  ;;  %3844 = vmatprep.subr.bf16.mxu1 %v5487_v22  ;;  %v6825_v53 = vld [vmem:[%s314_s9] sm:$0xff]  ;;  %v5533_v63 = vld [vmem:[%s6742_s8 + $0x1a4] ss:$16 sps:$4 sm:$0xff]   ;;  %v5537_v1 = vld [vmem:[%s6742_s8 + $0x1a0] ss:$16 sps:$4 sm:$0xff]  }
  0xb3   : > { %v839_v55 = vrot.slane %v6825_v53, %v6818_v50  ;;  %v5535_v0 = vld [vmem:[%s6742_s8 + $0x1ac] ss:$16 sps:$4 sm:$0xff]   ;;  %v5538_v2 = vld [vmem:[%s6742_s8 + $0x1a8] ss:$16 sps:$4 sm:$0xff]   ;;  %v5539_v3 = vld [vmem:[%s6742_s8 + $0x1c4] ss:$16 sps:$4 sm:$0xff]  }
  0xb4   : > { %v5541_v4 = vld [vmem:[%s6742_s8 + $0x1cc] ss:$16 sps:$4 sm:$0xff]   ;;  %v5543_v5 = vld [vmem:[%s6742_s8 + $0x1c0] ss:$16 sps:$4 sm:$0xff]   ;;  %v5544_v6 = vld [vmem:[%s6742_s8 + $0x1c8] ss:$16 sps:$4 sm:$0xff]  }
  0xb5   : > { %3517 = vmatpush1.bf16.msra.mxu0 %v5489_v23  ;;  %3845 = vmatpush1.bf16.msra.mxu1 %v5490_v24  ;;  %v847_v59 = vcombine.high %v839_v55, %v839_v55  ;;  %v5545_v7 = vld [vmem:[%s6742_s8 + $0x1e4] ss:$16 sps:$4 sm:$0xff]   ;;  %v5547_v8 = vld [vmem:[%s6742_s8 + $0x1ec] ss:$16 sps:$4 sm:$0xff]   ;;  %v5549_v9 = vld [vmem:[%s6742_s8 + $0x1e0] ss:$16 sps:$4 sm:$0xff]   ;;  %v6852_v14 = vrot.slane %v839_v55, %v6818_v50 }
  0xb6   : > { %3518 = vmatprep.subr.bf16.mxu0 %v5491_v25  ;;  %3846 = vmatprep.subr.bf16.mxu1 %v5493_v26  ;;  %v5550_v10 = vld [vmem:[%s6742_s8 + $0x1e8] ss:$16 sps:$4 sm:$0xff]   ;;  %v5553_v11 = vld [vmem:[%s6742_s8 + $0x204] ss:$16 sps:$4 sm:$0xff]   ;;  %v5556_v12 = vld [vmem:[%s6742_s8 + $0x20c] ss:$16 sps:$4 sm:$0xff]  }
  0xb7   : > { %v869_v61 = vrot.slane %v847_v59, %v6818_v50  ;;  %v5551_v13 = vld [vmem:[%s6742_s8 + $0x200] ss:$16 sps:$4 sm:$0xff]   ;;  %v5554_v15 = vld [vmem:[%s6742_s8 + $0x208] ss:$16 sps:$4 sm:$0xff]   ;;  %v5559_v16 = vld [vmem:[%s6742_s8 + $0x224] ss:$16 sps:$4 sm:$0xff]  }
  0xb8   : > { %v5562_v17 = vld [vmem:[%s6742_s8 + $0x22c] ss:$16 sps:$4 sm:$0xff]   ;;  %v5557_v19 = vld [vmem:[%s6742_s8 + $0x220] ss:$16 sps:$4 sm:$0xff]   ;;  %v5560_v20 = vld [vmem:[%s6742_s8 + $0x228] ss:$16 sps:$4 sm:$0xff]  }
  0xb9   : > { %3519 = vmatpush1.bf16.msra.mxu0 %v5495_v27  ;;  %3847 = vmatpush1.bf16.msra.mxu1 %v5496_v28  ;;  %v879_v18 = vcombine.high %v869_v61, %v869_v61  ;;  %v5565_v21 = vld [vmem:[%s6742_s8 + $0x244] ss:$16 sps:$4 sm:$0xff]   ;;  %v5568_v22 = vld [vmem:[%s6742_s8 + $0x24c] ss:$16 sps:$4 sm:$0xff]   ;;  %v5563_v23 = vld [vmem:[%s6742_s8 + $0x240] ss:$16 sps:$4 sm:$0xff]  }
  0xba   : > { %3520 = vmatprep.subr.bf16.mxu0 %v5497_v29  ;;  %3848 = vmatprep.subr.bf16.mxu1 %v5499_v30  ;;  %v5566_v24 = vld [vmem:[%s6742_s8 + $0x248] ss:$16 sps:$4 sm:$0xff]   ;;  %v5571_v25 = vld [vmem:[%s6742_s8 + $0x264] ss:$16 sps:$4 sm:$0xff]   ;;  %v5574_v26 = vld [vmem:[%s6742_s8 + $0x26c] ss:$16 sps:$4 sm:$0xff]  }
  0xbb   : > { %3538 = vmatprep.mubr.bf16.mxu0 %v869_v61  ;;  %3866 = vmatprep.mubr.bf16.mxu1 %v869_v61  ;;  %v5569_v27 = vld [vmem:[%s6742_s8 + $0x260] ss:$16 sps:$4 sm:$0xff]   ;;  %v5572_v28 = vld [vmem:[%s6742_s8 + $0x268] ss:$16 sps:$4 sm:$0xff]   ;;  %v5577_v29 = vld [vmem:[%s6742_s8 + $0x284] ss:$16 sps:$4 sm:$0xff]  }
  0xbc   : > { %v5580_v30 = vld [vmem:[%s6742_s8 + $0x28c] ss:$16 sps:$4 sm:$0xff]   ;;  %v5589_v37 = vld [vmem:[%s6742_s8 + $0x2c4] ss:$16 sps:$4 sm:$0xff]   ;;  %v5587_v39 = vld [vmem:[%s6742_s8 + $0x2c0] ss:$16 sps:$4 sm:$0xff]  }
  0xbd   : > { %3521 = vmatpush1.bf16.msra.mxu0 %v5501_v31  ;;  %3849 = vmatpush1.bf16.msra.mxu1 %v5502_v32  ;;  %v5575_v31 = vld [vmem:[%s6742_s8 + $0x280] ss:$16 sps:$4 sm:$0xff]   ;;  %v5578_v32 = vld [vmem:[%s6742_s8 + $0x288] ss:$16 sps:$4 sm:$0xff]   ;;  %v5592_v38 = vld [vmem:[%s6742_s8 + $0x2cc] ss:$16 sps:$4 sm:$0xff]  }
  0xbe   : > { %3522 = vmatprep.subr.bf16.mxu0 %v5503_v33  ;;  %3850 = vmatprep.subr.bf16.mxu1 %v5505_v34  ;;  %v5583_v33 = vld [vmem:[%s6742_s8 + $0x2a4] ss:$16 sps:$4 sm:$0xff]   ;;  %v5586_v34 = vld [vmem:[%s6742_s8 + $0x2ac] ss:$16 sps:$4 sm:$0xff]   ;;  %v5593_v43 = vld [vmem:[%s6742_s8 + $0x2e0] ss:$16 sps:$4 sm:$0xff]  }
  0xbf   : > { %v5608_v55 = vld [vmem:[%s6742_s8 + $0x328] ss:$16 sps:$4 sm:$0xff]   ;;  %v5622_v61 = vld [vmem:[%s6742_s8 + $0x36c] ss:$16 sps:$4 sm:$0xff]  }
  0xc0   : > { %v5614_v59 = vld [vmem:[%s6742_s8 + $0x348] ss:$16 sps:$4 sm:$0xff]  }
  0xc1   : > { %3523 = vmatpush1.bf16.msra.mxu0 %v5507_v35  ;;  %3851 = vmatpush1.bf16.msra.mxu1 %v5508_v36  ;;  %v5581_v35 = vld [vmem:[%s6742_s8 + $0x2a0] ss:$16 sps:$4 sm:$0xff]   ;;  %v5584_v36 = vld [vmem:[%s6742_s8 + $0x2a8] ss:$16 sps:$4 sm:$0xff]  }
  0xc2   : > { %3524 = vmatprep.subr.bf16.mxu0 %v5509_v40  ;;  %3852 = vmatprep.subr.bf16.mxu1 %v5511_v41  ;;  %v5590_v40 = vld [vmem:[%s6742_s8 + $0x2c8] ss:$16 sps:$4 sm:$0xff]   ;;  %v5595_v41 = vld [vmem:[%s6742_s8 + $0x2e4] ss:$16 sps:$4 sm:$0xff]  }
  0xc5   : > { %3525 = vmatpush1.bf16.msra.mxu0 %v5513_v42  ;;  %3853 = vmatpush1.bf16.msra.mxu1 %v5514_v45  ;;  %v5598_v42 = vld [vmem:[%s6742_s8 + $0x2ec] ss:$16 sps:$4 sm:$0xff]   ;;  %v5596_v45 = vld [vmem:[%s6742_s8 + $0x2e8] ss:$16 sps:$4 sm:$0xff]  }
  0xc6   : > { %3526 = vmatprep.subr.bf16.mxu0 %v5515_v46  ;;  %3854 = vmatprep.subr.bf16.mxu1 %v5517_v47  ;;  %v5601_v46 = vld [vmem:[%s6742_s8 + $0x304] ss:$16 sps:$4 sm:$0xff]   ;;  %v5604_v47 = vld [vmem:[%s6742_s8 + $0x30c] ss:$16 sps:$4 sm:$0xff]  }
  0xc9   : > { %3527 = vmatpush1.bf16.msra.mxu0 %v5519_v48  ;;  %3855 = vmatpush1.bf16.msra.mxu1 %v5520_v49  ;;  %v5599_v48 = vld [vmem:[%s6742_s8 + $0x300] ss:$16 sps:$4 sm:$0xff]   ;;  %v5602_v49 = vld [vmem:[%s6742_s8 + $0x308] ss:$16 sps:$4 sm:$0xff]  }
  0xca   : > { %3528 = vmatprep.subr.bf16.mxu0 %v5521_v51  ;;  %3856 = vmatprep.subr.bf16.mxu1 %v5523_v52  ;;  %v5607_v51 = vld [vmem:[%s6742_s8 + $0x324] ss:$16 sps:$4 sm:$0xff]   ;;  %v5610_v52 = vld [vmem:[%s6742_s8 + $0x32c] ss:$16 sps:$4 sm:$0xff]  }
  0xcd   : > { %3529 = vmatpush1.bf16.msra.mxu0 %v5525_v54  ;;  %3857 = vmatpush1.bf16.msra.mxu1 %v5526_v56  ;;  %v5605_v54 = vld [vmem:[%s6742_s8 + $0x320] ss:$16 sps:$4 sm:$0xff]   ;;  %v5613_v56 = vld [vmem:[%s6742_s8 + $0x344] ss:$16 sps:$4 sm:$0xff]  }
  0xce   : > { %3530 = vmatprep.subr.bf16.mxu0 %v5527_v57  ;;  %3858 = vmatprep.subr.bf16.mxu1 %v5529_v58  ;;  %v5616_v57 = vld [vmem:[%s6742_s8 + $0x34c] ss:$16 sps:$4 sm:$0xff]   ;;  %v5611_v58 = vld [vmem:[%s6742_s8 + $0x340] ss:$16 sps:$4 sm:$0xff]  }
  0xd1   : > { %3531 = vmatpush1.bf16.msra.mxu0 %v5531_v60  ;;  %3859 = vmatpush1.bf16.msra.mxu1 %v5532_v62  ;;  %v5619_v60 = vld [vmem:[%s6742_s8 + $0x364] ss:$16 sps:$4 sm:$0xff]   ;;  %v5617_v62 = vld [vmem:[%s6742_s8 + $0x360] ss:$16 sps:$4 sm:$0xff]  }
  0xd2   : > { %3532 = vmatprep.subr.bf16.mxu0 %v5533_v63  ;;  %3860 = vmatprep.subr.bf16.mxu1 %v5535_v0  ;;  %v5620_v63 = vld [vmem:[%s6742_s8 + $0x368] ss:$16 sps:$4 sm:$0xff]   ;;  %v5625_v0 = vld [vmem:[%s6742_s8 + $0x384] ss:$16 sps:$4 sm:$0xff]  }
  0xd5   : > { %3533 = vmatpush1.bf16.msra.mxu0 %v5537_v1  ;;  %3861 = vmatpush1.bf16.msra.mxu1 %v5538_v2  ;;  %v5628_v1 = vld [vmem:[%s6742_s8 + $0x38c] ss:$16 sps:$4 sm:$0xff]   ;;  %v5623_v2 = vld [vmem:[%s6742_s8 + $0x380] ss:$16 sps:$4 sm:$0xff]  }
  0xd6   : > { %3534 = vmatprep.subr.bf16.mxu0 %v5539_v3  ;;  %3862 = vmatprep.subr.bf16.mxu1 %v5541_v4  ;;  %v5626_v3 = vld [vmem:[%s6742_s8 + $0x388] ss:$16 sps:$4 sm:$0xff]   ;;  %v5631_v4 = vld [vmem:[%s6742_s8 + $0x3a4] ss:$16 sps:$4 sm:$0xff]  }
  0xd9   : > { %3535 = vmatpush1.bf16.msra.mxu0 %v5543_v5  ;;  %3863 = vmatpush1.bf16.msra.mxu1 %v5544_v6  ;;  %v5634_v5 = vld [vmem:[%s6742_s8 + $0x3ac] ss:$16 sps:$4 sm:$0xff]   ;;  %v5629_v6 = vld [vmem:[%s6742_s8 + $0x3a0] ss:$16 sps:$4 sm:$0xff]  }
  0xda   : > { %3536 = vmatprep.subr.bf16.mxu0 %v5545_v7  ;;  %3864 = vmatprep.subr.bf16.mxu1 %v5547_v8  ;;  %v5632_v7 = vld [vmem:[%s6742_s8 + $0x3a8] ss:$16 sps:$4 sm:$0xff]   ;;  %v5637_v8 = vld [vmem:[%s6742_s8 + $0x3c4] ss:$16 sps:$4 sm:$0xff]  }
  0xdd   : > { %3537 = vmatpush1.bf16.msra.mxu0 %v5549_v9  ;;  %3865 = vmatpush1.bf16.msra.mxu1 %v5550_v10  ;;  %v5640_v9 = vld [vmem:[%s6742_s8 + $0x3cc] ss:$16 sps:$4 sm:$0xff]   ;;  %v832_v10 = vcombine.high %v6825_v53, %v6825_v53  ;;  %v5644_v53 = vld [vmem:[%s6742_s8 + $0x3e8] ss:$16 sps:$4 sm:$0xff]  }
  0xde   : > { %3547 = vmatprep.subr.bf16.mxu0 %v5553_v11  ;;  %3875 = vmatprep.subr.bf16.mxu1 %v5556_v12  ;;  %v5635_v11 = vld [vmem:[%s6742_s8 + $0x3c0] ss:$16 sps:$4 sm:$0xff]   ;;  %v5638_v12 = vld [vmem:[%s6742_s8 + $0x3c8] ss:$16 sps:$4 sm:$0xff]  }
  0xe0   : > { %3539 = vmatmul.mubr.bf16.vlgmr.msra.gmra.mrb[0].mxu0 %v6852_v14  ;;  %3867 = vmatmul.mubr.bf16.vlgmr.msra.gmra.mrb[0].mxu1 %v6852_v14 }
  0xe1   : > { %3548 = vmatpush1.bf16.msra.mxu0 %v5551_v13  ;;  %3876 = vmatpush1.bf16.msra.mxu1 %v5554_v15  ;;  %v5643_v13 = vld [vmem:[%s6742_s8 + $0x3e4] ss:$16 sps:$4 sm:$0xff]   ;;  %v5646_v15 = vld [vmem:[%s6742_s8 + $0x3ec] ss:$16 sps:$4 sm:$0xff]  }
  0xe2   : > { %3549 = vmatprep.subr.bf16.mxu0 %v5559_v16  ;;  %3877 = vmatprep.subr.bf16.mxu1 %v5562_v17  ;;  %v6918_v16 = vrot.slane %v832_v10, %v6818_v50  ;;  %v5641_v17 = vld [vmem:[%s6742_s8 + $0x3e0] ss:$16 sps:$4 sm:$0xff]   ;;  %v5722_v10 = vld [vmem:[%s6742_s8 + $0x588] ss:$16 sps:$4 sm:$0xff]  }
  0xe3   : > { %3579 = vmatprep.mubr.bf16.mxu0 %v879_v18  ;;  %3907 = vmatprep.mubr.bf16.mxu1 %v879_v18  ;;  %v5649_v18 = vld [vmem:[%s6742_s8 + $0x404] ss:$16 sps:$4 sm:$0xff]  }
  0xe5   : > { %3550 = vmatpush1.bf16.msra.mxu0 %v5557_v19  ;;  %3878 = vmatpush1.bf16.msra.mxu1 %v5560_v20  ;;  %v5652_v19 = vld [vmem:[%s6742_s8 + $0x40c] ss:$16 sps:$4 sm:$0xff]   ;;  %v848_v20 = vcombine.high %v6918_v16, %v6918_v16 }
  0xe6   : > { %3551 = vmatprep.subr.bf16.mxu0 %v5565_v21  ;;  %3879 = vmatprep.subr.bf16.mxu1 %v5568_v22  ;;  %v5647_v21 = vld [vmem:[%s6742_s8 + $0x400] ss:$16 sps:$4 sm:$0xff]   ;;  %v877_v22 = vcombine.high %v6852_v14, %v6852_v14  ;;  %v5656_v14 = vld [vmem:[%s6742_s8 + $0x428] ss:$16 sps:$4 sm:$0xff]  }
  0xe9   : > { %3552 = vmatpush1.bf16.msra.mxu0 %v5563_v23  ;;  %3880 = vmatpush1.bf16.msra.mxu1 %v5566_v24  ;;  %v5650_v23 = vld [vmem:[%s6742_s8 + $0x408] ss:$16 sps:$4 sm:$0xff]   ;;  %v5655_v24 = vld [vmem:[%s6742_s8 + $0x424] ss:$16 sps:$4 sm:$0xff]  }
  0xea   : > { %3553 = vmatprep.subr.bf16.mxu0 %v5571_v25  ;;  %3881 = vmatprep.subr.bf16.mxu1 %v5574_v26  ;;  %v5658_v25 = vld [vmem:[%s6742_s8 + $0x42c] ss:$16 sps:$4 sm:$0xff]   ;;  %v6933_v26 = vrot.slane %v848_v20, %v6818_v50  ;;  %v5739_v20 = vld [vmem:[%s6742_s8 + $0x5e4] ss:$16 sps:$4 sm:$0xff]  }
  0xed   : > { %3554 = vmatpush1.bf16.msra.mxu0 %v5569_v27  ;;  %3882 = vmatpush1.bf16.msra.mxu1 %v5572_v28  ;;  %v5653_v27 = vld [vmem:[%s6742_s8 + $0x420] ss:$16 sps:$4 sm:$0xff]   ;;  %v5661_v28 = vld [vmem:[%s6742_s8 + $0x444] ss:$16 sps:$4 sm:$0xff]  }
  0xee   : > { %3555 = vmatprep.subr.bf16.mxu0 %v5577_v29  ;;  %3883 = vmatprep.subr.bf16.mxu1 %v5580_v30  ;;  %v5664_v29 = vld [vmem:[%s6742_s8 + $0x44c] ss:$16 sps:$4 sm:$0xff]   ;;  %v5659_v30 = vld [vmem:[%s6742_s8 + $0x440] ss:$16 sps:$4 sm:$0xff]  }
  0xf1   : > { %3556 = vmatpush1.bf16.msra.mxu0 %v5575_v31  ;;  %3884 = vmatpush1.bf16.msra.mxu1 %v5578_v32  ;;  %v5662_v31 = vld [vmem:[%s6742_s8 + $0x448] ss:$16 sps:$4 sm:$0xff]   ;;  %v5667_v32 = vld [vmem:[%s6742_s8 + $0x464] ss:$16 sps:$4 sm:$0xff]  }
  0xf2   : > { %3557 = vmatprep.subr.bf16.mxu0 %v5583_v33  ;;  %3885 = vmatprep.subr.bf16.mxu1 %v5586_v34  ;;  %v5670_v33 = vld [vmem:[%s6742_s8 + $0x46c] ss:$16 sps:$4 sm:$0xff]   ;;  %v5665_v34 = vld [vmem:[%s6742_s8 + $0x460] ss:$16 sps:$4 sm:$0xff]  }
  0xf5   : > { %3558 = vmatpush1.bf16.msra.mxu0 %v5581_v35  ;;  %3886 = vmatpush1.bf16.msra.mxu1 %v5584_v36  ;;  %v5668_v35 = vld [vmem:[%s6742_s8 + $0x468] ss:$16 sps:$4 sm:$0xff]   ;;  %v5673_v36 = vld [vmem:[%s6742_s8 + $0x484] ss:$16 sps:$4 sm:$0xff]  }
  0xf6   : > { %3559 = vmatprep.subr.bf16.mxu0 %v5589_v37  ;;  %3887 = vmatprep.subr.bf16.mxu1 %v5592_v38  ;;  %v5676_v37 = vld [vmem:[%s6742_s8 + $0x48c] ss:$16 sps:$4 sm:$0xff]   ;;  %v5671_v38 = vld [vmem:[%s6742_s8 + $0x480] ss:$16 sps:$4 sm:$0xff]  }
  0xf9   : > { %3560 = vmatpush1.bf16.msra.mxu0 %v5587_v39  ;;  %3888 = vmatpush1.bf16.msra.mxu1 %v5590_v40  ;;  %v5674_v39 = vld [vmem:[%s6742_s8 + $0x488] ss:$16 sps:$4 sm:$0xff]   ;;  %v5679_v40 = vld [vmem:[%s6742_s8 + $0x4a4] ss:$16 sps:$4 sm:$0xff]  }
  0xfa   : > { %3561 = vmatprep.subr.bf16.mxu0 %v5595_v41  ;;  %3889 = vmatprep.subr.bf16.mxu1 %v5598_v42  ;;  %v5682_v41 = vld [vmem:[%s6742_s8 + $0x4ac] ss:$16 sps:$4 sm:$0xff]   ;;  %v5677_v42 = vld [vmem:[%s6742_s8 + $0x4a0] ss:$16 sps:$4 sm:$0xff]  }
  0xfd   : > { %3562 = vmatpush1.bf16.msra.mxu0 %v5593_v43  ;;  %3890 = vmatpush1.bf16.msra.mxu1 %v5596_v45  ;;  %v5680_v43 = vld [vmem:[%s6742_s8 + $0x4a8] ss:$16 sps:$4 sm:$0xff]   ;;  %v5685_v45 = vld [vmem:[%s6742_s8 + $0x4c4] ss:$16 sps:$4 sm:$0xff]  }
  0xfe   : > { %3563 = vmatprep.subr.bf16.mxu0 %v5601_v46  ;;  %3891 = vmatprep.subr.bf16.mxu1 %v5604_v47  ;;  %v5688_v46 = vld [vmem:[%s6742_s8 + $0x4cc] ss:$16 sps:$4 sm:$0xff]   ;;  %v5683_v47 = vld [vmem:[%s6742_s8 + $0x4c0] ss:$16 sps:$4 sm:$0xff]  }
 0x101   : > { %3564 = vmatpush1.bf16.msra.mxu0 %v5599_v48  ;;  %3892 = vmatpush1.bf16.msra.mxu1 %v5602_v49  ;;  %v5686_v48 = vld [vmem:[%s6742_s8 + $0x4c8] ss:$16 sps:$4 sm:$0xff]   ;;  %v5691_v49 = vld [vmem:[%s6742_s8 + $0x4e4] ss:$16 sps:$4 sm:$0xff]  }
 0x102   : > { %3565 = vmatprep.subr.bf16.mxu0 %v5607_v51  ;;  %3893 = vmatprep.subr.bf16.mxu1 %v5610_v52  ;;  %v5694_v51 = vld [vmem:[%s6742_s8 + $0x4ec] ss:$16 sps:$4 sm:$0xff]   ;;  %v5689_v52 = vld [vmem:[%s6742_s8 + $0x4e0] ss:$16 sps:$4 sm:$0xff]  }
 0x105   : > { %3566 = vmatpush1.bf16.msra.mxu0 %v5605_v54  ;;  %3894 = vmatpush1.bf16.msra.mxu1 %v5608_v55  ;;  %v5692_v54 = vld [vmem:[%s6742_s8 + $0x4e8] ss:$16 sps:$4 sm:$0xff]   ;;  %v5697_v55 = vld [vmem:[%s6742_s8 + $0x504] ss:$16 sps:$4 sm:$0xff]  }
 0x106   : > { %3567 = vmatprep.subr.bf16.mxu0 %v5613_v56  ;;  %3895 = vmatprep.subr.bf16.mxu1 %v5616_v57  ;;  %v5700_v56 = vld [vmem:[%s6742_s8 + $0x50c] ss:$16 sps:$4 sm:$0xff]   ;;  %v5695_v57 = vld [vmem:[%s6742_s8 + $0x500] ss:$16 sps:$4 sm:$0xff]  }
 0x109   : > { %3568 = vmatpush1.bf16.msra.mxu0 %v5611_v58  ;;  %3896 = vmatpush1.bf16.msra.mxu1 %v5614_v59  ;;  %v5698_v58 = vld [vmem:[%s6742_s8 + $0x508] ss:$16 sps:$4 sm:$0xff]   ;;  %v5703_v59 = vld [vmem:[%s6742_s8 + $0x524] ss:$16 sps:$4 sm:$0xff]  }
 0x10a   : > { %3569 = vmatprep.subr.bf16.mxu0 %v5619_v60  ;;  %3897 = vmatprep.subr.bf16.mxu1 %v5622_v61  ;;  %v5706_v60 = vld [vmem:[%s6742_s8 + $0x52c] ss:$16 sps:$4 sm:$0xff]   ;;  %v5701_v61 = vld [vmem:[%s6742_s8 + $0x520] ss:$16 sps:$4 sm:$0xff]  }
 0x10d   : > { %3570 = vmatpush1.bf16.msra.mxu0 %v5617_v62  ;;  %3898 = vmatpush1.bf16.msra.mxu1 %v5620_v63  ;;  %v5704_v62 = vld [vmem:[%s6742_s8 + $0x528] ss:$16 sps:$4 sm:$0xff]   ;;  %v5709_v63 = vld [vmem:[%s6742_s8 + $0x544] ss:$16 sps:$4 sm:$0xff]  }
 0x10e   : > { %3571 = vmatprep.subr.bf16.mxu0 %v5625_v0  ;;  %3899 = vmatprep.subr.bf16.mxu1 %v5628_v1  ;;  %v5712_v0 = vld [vmem:[%s6742_s8 + $0x54c] ss:$16 sps:$4 sm:$0xff]   ;;  %v5707_v1 = vld [vmem:[%s6742_s8 + $0x540] ss:$16 sps:$4 sm:$0xff]  }
 0x111   : > { %3572 = vmatpush1.bf16.msra.mxu0 %v5623_v2  ;;  %3900 = vmatpush1.bf16.msra.mxu1 %v5626_v3  ;;  %v5710_v2 = vld [vmem:[%s6742_s8 + $0x548] ss:$16 sps:$4 sm:$0xff]   ;;  %v5715_v3 = vld [vmem:[%s6742_s8 + $0x564] ss:$16 sps:$4 sm:$0xff]  }
 0x112   : > { %3573 = vmatprep.subr.bf16.mxu0 %v5631_v4  ;;  %3901 = vmatprep.subr.bf16.mxu1 %v5634_v5  ;;  %v5718_v4 = vld [vmem:[%s6742_s8 + $0x56c] ss:$16 sps:$4 sm:$0xff]   ;;  %v5713_v5 = vld [vmem:[%s6742_s8 + $0x560] ss:$16 sps:$4 sm:$0xff]  }
 0x115   : > { %3574 = vmatpush1.bf16.msra.mxu0 %v5629_v6  ;;  %3902 = vmatpush1.bf16.msra.mxu1 %v5632_v7  ;;  %v5716_v6 = vld [vmem:[%s6742_s8 + $0x568] ss:$16 sps:$4 sm:$0xff]   ;;  %v5721_v7 = vld [vmem:[%s6742_s8 + $0x584] ss:$16 sps:$4 sm:$0xff]  }
 0x116   : > { %3575 = vmatprep.subr.bf16.mxu0 %v5637_v8  ;;  %3903 = vmatprep.subr.bf16.mxu1 %v5640_v9  ;;  %v5724_v8 = vld [vmem:[%s6742_s8 + $0x58c] ss:$16 sps:$4 sm:$0xff]   ;;  %v5719_v9 = vld [vmem:[%s6742_s8 + $0x580] ss:$16 sps:$4 sm:$0xff]  }
 0x119   : > { %3576 = vmatpush1.bf16.msra.mxu0 %v5635_v11  ;;  %3904 = vmatpush1.bf16.msra.mxu1 %v5638_v12  ;;  %v5727_v11 = vld [vmem:[%s6742_s8 + $0x5a4] ss:$16 sps:$4 sm:$0xff]   ;;  %v5730_v12 = vld [vmem:[%s6742_s8 + $0x5ac] ss:$16 sps:$4 sm:$0xff]  }
 0x11a   : > { %3577 = vmatprep.subr.bf16.mxu0 %v5643_v13  ;;  %3905 = vmatprep.subr.bf16.mxu1 %v5646_v15  ;;  %v5725_v13 = vld [vmem:[%s6742_s8 + $0x5a0] ss:$16 sps:$4 sm:$0xff]   ;;  %v5728_v15 = vld [vmem:[%s6742_s8 + $0x5a8] ss:$16 sps:$4 sm:$0xff]  }
 0x11d   : > { %3578 = vmatpush1.bf16.msra.mxu0 %v5641_v17  ;;  %3906 = vmatpush1.bf16.msra.mxu1 %v5644_v53  ;;  %v5733_v17 = vld [vmem:[%s6742_s8 + $0x5c4] ss:$16 sps:$4 sm:$0xff]   ;;  %v5736_v53 = vld [vmem:[%s6742_s8 + $0x5cc] ss:$16 sps:$4 sm:$0xff]  }
 0x11e   : > { %3588 = vmatprep.subr.bf16.mxu0 %v5649_v18  ;;  %3916 = vmatprep.subr.bf16.mxu1 %v5652_v19  ;;  %v5731_v18 = vld [vmem:[%s6742_s8 + $0x5c0] ss:$16 sps:$4 sm:$0xff]   ;;  %v5734_v19 = vld [vmem:[%s6742_s8 + $0x5c8] ss:$16 sps:$4 sm:$0xff]  }
 0x120   : > { %3580 = vmatmul.mubr.bf16.vlgmr.msra.gmra.mrb[0].mxu0 %v877_v22  ;;  %3908 = vmatmul.mubr.bf16.vlgmr.msra.gmra.mrb[0].mxu1 %v877_v22  ;;  %v5737_v22 = vld [vmem:[%s6742_s8 + $0x5e0] ss:$16 sps:$4 sm:$0xff]  }
 0x121   : > { %3589 = vmatpush1.bf16.msra.mxu0 %v5647_v21  ;;  %3917 = vmatpush1.bf16.msra.mxu1 %v5650_v23  ;;  %v5742_v21 = vld [vmem:[%s6742_s8 + $0x5ec] ss:$16 sps:$4 sm:$0xff]   ;;  %v5740_v23 = vld [vmem:[%s6742_s8 + $0x5e8] ss:$16 sps:$4 sm:$0xff]  }
 0x122   : > { %3590 = vmatprep.subr.bf16.mxu0 %v5655_v24  ;;  %3918 = vmatprep.subr.bf16.mxu1 %v5658_v25  ;;  %v5746_v24 = vld [vmem:[%s6742_s8 + $0x604] ss:$16 sps:$4 sm:$0xff]   ;;  %v5749_v25 = vld [vmem:[%s6742_s8 + $0x60c] ss:$16 sps:$4 sm:$0xff]  }
 0x123   : > { %3620 = vmatprep.mubr.bf16.mxu0 %v6933_v26  ;;  %3948 = vmatprep.mubr.bf16.mxu1 %v6933_v26 }
 0x125   : > { %3591 = vmatpush1.bf16.msra.mxu0 %v5653_v27  ;;  %3919 = vmatpush1.bf16.msra.mxu1 %v5656_v14  ;;  %v5744_v27 = vld [vmem:[%s6742_s8 + $0x600] ss:$16 sps:$4 sm:$0xff]   ;;  %v7000_v14 = vrot.slane %v6918_v16, %v6818_v50 }
 0x126   : > { %3592 = vmatprep.subr.bf16.mxu0 %v5661_v28  ;;  %3920 = vmatprep.subr.bf16.mxu1 %v5664_v29  ;;  %v5747_v28 = vld [vmem:[%s6742_s8 + $0x608] ss:$16 sps:$4 sm:$0xff]   ;;  %v5752_v29 = vld [vmem:[%s6742_s8 + $0x624] ss:$16 sps:$4 sm:$0xff]   ;;  %v5750_v16 = vld [vmem:[%s6742_s8 + $0x620] ss:$16 sps:$4 sm:$0xff]  }
 0x129   : > { %3593 = vmatpush1.bf16.msra.mxu0 %v5659_v30  ;;  %3921 = vmatpush1.bf16.msra.mxu1 %v5662_v31  ;;  %v5755_v30 = vld [vmem:[%s6742_s8 + $0x62c] ss:$16 sps:$4 sm:$0xff]   ;;  %v880_v31 = vcombine.high %v6933_v26, %v6933_v26  ;;  %v5756_v26 = vld [vmem:[%s6742_s8 + $0x640] ss:$16 sps:$4 sm:$0xff]  }
 0x12a   : > { %3594 = vmatprep.subr.bf16.mxu0 %v5667_v32  ;;  %3922 = vmatprep.subr.bf16.mxu1 %v5670_v33  ;;  %v5753_v32 = vld [vmem:[%s6742_s8 + $0x628] ss:$16 sps:$4 sm:$0xff]   ;;  %v5758_v33 = vld [vmem:[%s6742_s8 + $0x644] ss:$16 sps:$4 sm:$0xff]  }
 0x12d   : > { %3595 = vmatpush1.bf16.msra.mxu0 %v5665_v34  ;;  %3923 = vmatpush1.bf16.msra.mxu1 %v5668_v35  ;;  %v5761_v34 = vld [vmem:[%s6742_s8 + $0x64c] ss:$16 sps:$4 sm:$0xff]   ;;  %v5759_v35 = vld [vmem:[%s6742_s8 + $0x648] ss:$16 sps:$4 sm:$0xff]  }
 0x12e   : > { %3596 = vmatprep.subr.bf16.mxu0 %v5673_v36  ;;  %3924 = vmatprep.subr.bf16.mxu1 %v5676_v37  ;;  %v5764_v36 = vld [vmem:[%s6742_s8 + $0x664] ss:$16 sps:$4 sm:$0xff]   ;;  %v5767_v37 = vld [vmem:[%s6742_s8 + $0x66c] ss:$16 sps:$4 sm:$0xff]  }
 0x131   : > { %3597 = vmatpush1.bf16.msra.mxu0 %v5671_v38  ;;  %3925 = vmatpush1.bf16.msra.mxu1 %v5674_v39  ;;  %v5762_v38 = vld [vmem:[%s6742_s8 + $0x660] ss:$16 sps:$4 sm:$0xff]   ;;  %v5765_v39 = vld [vmem:[%s6742_s8 + $0x668] ss:$16 sps:$4 sm:$0xff]  }
 0x132   : > { %3598 = vmatprep.subr.bf16.mxu0 %v5679_v40  ;;  %3926 = vmatprep.subr.bf16.mxu1 %v5682_v41  ;;  %v5770_v40 = vld [vmem:[%s6742_s8 + $0x684] ss:$16 sps:$4 sm:$0xff]   ;;  %v5773_v41 = vld [vmem:[%s6742_s8 + $0x68c] ss:$16 sps:$4 sm:$0xff]  }
 0x135   : > { %3599 = vmatpush1.bf16.msra.mxu0 %v5677_v42  ;;  %3927 = vmatpush1.bf16.msra.mxu1 %v5680_v43  ;;  %v5768_v42 = vld [vmem:[%s6742_s8 + $0x680] ss:$16 sps:$4 sm:$0xff]   ;;  %v5771_v43 = vld [vmem:[%s6742_s8 + $0x688] ss:$16 sps:$4 sm:$0xff]  }
 0x136   : > { %3600 = vmatprep.subr.bf16.mxu0 %v5685_v45  ;;  %3928 = vmatprep.subr.bf16.mxu1 %v5688_v46  ;;  %v5776_v45 = vld [vmem:[%s6742_s8 + $0x6a4] ss:$16 sps:$4 sm:$0xff]   ;;  %v5779_v46 = vld [vmem:[%s6742_s8 + $0x6ac] ss:$16 sps:$4 sm:$0xff]  }
 0x139   : > { %3601 = vmatpush1.bf16.msra.mxu0 %v5683_v47  ;;  %3929 = vmatpush1.bf16.msra.mxu1 %v5686_v48  ;;  %v5774_v47 = vld [vmem:[%s6742_s8 + $0x6a0] ss:$16 sps:$4 sm:$0xff]   ;;  %v5777_v48 = vld [vmem:[%s6742_s8 + $0x6a8] ss:$16 sps:$4 sm:$0xff]  }
 0x13a   : > { %3602 = vmatprep.subr.bf16.mxu0 %v5691_v49  ;;  %3930 = vmatprep.subr.bf16.mxu1 %v5694_v51  ;;  %v5782_v49 = vld [vmem:[%s6742_s8 + $0x6c4] ss:$16 sps:$4 sm:$0xff]   ;;  %v5785_v51 = vld [vmem:[%s6742_s8 + $0x6cc] ss:$16 sps:$4 sm:$0xff]  }
 0x13d   : > { %3603 = vmatpush1.bf16.msra.mxu0 %v5689_v52  ;;  %3931 = vmatpush1.bf16.msra.mxu1 %v5692_v54  ;;  %v5780_v52 = vld [vmem:[%s6742_s8 + $0x6c0] ss:$16 sps:$4 sm:$0xff]   ;;  %v5783_v54 = vld [vmem:[%s6742_s8 + $0x6c8] ss:$16 sps:$4 sm:$0xff]  }
 0x13e   : > { %3604 = vmatprep.subr.bf16.mxu0 %v5697_v55  ;;  %3932 = vmatprep.subr.bf16.mxu1 %v5700_v56  ;;  %v5788_v55 = vld [vmem:[%s6742_s8 + $0x6e4] ss:$16 sps:$4 sm:$0xff]   ;;  %v5791_v56 = vld [vmem:[%s6742_s8 + $0x6ec] ss:$16 sps:$4 sm:$0xff]  }
 0x141   : > { %3605 = vmatpush1.bf16.msra.mxu0 %v5695_v57  ;;  %3933 = vmatpush1.bf16.msra.mxu1 %v5698_v58  ;;  %v5786_v57 = vld [vmem:[%s6742_s8 + $0x6e0] ss:$16 sps:$4 sm:$0xff]   ;;  %v5789_v58 = vld [vmem:[%s6742_s8 + $0x6e8] ss:$16 sps:$4 sm:$0xff]  }
 0x142   : > { %3606 = vmatprep.subr.bf16.mxu0 %v5703_v59  ;;  %3934 = vmatprep.subr.bf16.mxu1 %v5706_v60  ;;  %v5794_v59 = vld [vmem:[%s6742_s8 + $0x704] ss:$16 sps:$4 sm:$0xff]   ;;  %v5797_v60 = vld [vmem:[%s6742_s8 + $0x70c] ss:$16 sps:$4 sm:$0xff]  }
 0x145   : > { %3607 = vmatpush1.bf16.msra.mxu0 %v5701_v61  ;;  %3935 = vmatpush1.bf16.msra.mxu1 %v5704_v62  ;;  %v5792_v61 = vld [vmem:[%s6742_s8 + $0x700] ss:$16 sps:$4 sm:$0xff]   ;;  %v5795_v62 = vld [vmem:[%s6742_s8 + $0x708] ss:$16 sps:$4 sm:$0xff]  }
 0x146   : > { %3608 = vmatprep.subr.bf16.mxu0 %v5709_v63  ;;  %3936 = vmatprep.subr.bf16.mxu1 %v5712_v0  ;;  %v5800_v63 = vld [vmem:[%s6742_s8 + $0x724] ss:$16 sps:$4 sm:$0xff]   ;;  %v5803_v0 = vld [vmem:[%s6742_s8 + $0x72c] ss:$16 sps:$4 sm:$0xff]  }
 0x149   : > { %3609 = vmatpush1.bf16.msra.mxu0 %v5707_v1  ;;  %3937 = vmatpush1.bf16.msra.mxu1 %v5710_v2  ;;  %v5798_v1 = vld [vmem:[%s6742_s8 + $0x720] ss:$16 sps:$4 sm:$0xff]   ;;  %v5801_v2 = vld [vmem:[%s6742_s8 + $0x728] ss:$16 sps:$4 sm:$0xff]  }
 0x14a   : > { %3610 = vmatprep.subr.bf16.mxu0 %v5715_v3  ;;  %3938 = vmatprep.subr.bf16.mxu1 %v5718_v4  ;;  %v5806_v3 = vld [vmem:[%s6742_s8 + $0x744] ss:$16 sps:$4 sm:$0xff]   ;;  %v5809_v4 = vld [vmem:[%s6742_s8 + $0x74c] ss:$16 sps:$4 sm:$0xff]  }
 0x14d   : > { %3611 = vmatpush1.bf16.msra.mxu0 %v5713_v5  ;;  %3939 = vmatpush1.bf16.msra.mxu1 %v5716_v6  ;;  %v5804_v5 = vld [vmem:[%s6742_s8 + $0x740] ss:$16 sps:$4 sm:$0xff]   ;;  %v5807_v6 = vld [vmem:[%s6742_s8 + $0x748] ss:$16 sps:$4 sm:$0xff]  }
 0x14e   : > { %3612 = vmatprep.subr.bf16.mxu0 %v5721_v7  ;;  %3940 = vmatprep.subr.bf16.mxu1 %v5724_v8  ;;  %v5812_v7 = vld [vmem:[%s6742_s8 + $0x764] ss:$16 sps:$4 sm:$0xff]   ;;  %v5815_v8 = vld [vmem:[%s6742_s8 + $0x76c] ss:$16 sps:$4 sm:$0xff]  }
 0x151   : > { %3613 = vmatpush1.bf16.msra.mxu0 %v5719_v9  ;;  %3941 = vmatpush1.bf16.msra.mxu1 %v5722_v10  ;;  %v5810_v9 = vld [vmem:[%s6742_s8 + $0x760] ss:$16 sps:$4 sm:$0xff]   ;;  %v5813_v10 = vld [vmem:[%s6742_s8 + $0x768] ss:$16 sps:$4 sm:$0xff]  }
 0x152   : > { %3614 = vmatprep.subr.bf16.mxu0 %v5727_v11  ;;  %3942 = vmatprep.subr.bf16.mxu1 %v5730_v12  ;;  %v5818_v11 = vld [vmem:[%s6742_s8 + $0x784] ss:$16 sps:$4 sm:$0xff]   ;;  %v5821_v12 = vld [vmem:[%s6742_s8 + $0x78c] ss:$16 sps:$4 sm:$0xff]  }
 0x155   : > { %3615 = vmatpush1.bf16.msra.mxu0 %v5725_v13  ;;  %3943 = vmatpush1.bf16.msra.mxu1 %v5728_v15  ;;  %v5816_v13 = vld [vmem:[%s6742_s8 + $0x780] ss:$16 sps:$4 sm:$0xff]   ;;  %v5819_v15 = vld [vmem:[%s6742_s8 + $0x788] ss:$16 sps:$4 sm:$0xff]  }
 0x156   : > { %3616 = vmatprep.subr.bf16.mxu0 %v5733_v17  ;;  %3944 = vmatprep.subr.bf16.mxu1 %v5736_v53  ;;  %v5824_v17 = vld [vmem:[%s6742_s8 + $0x7a4] ss:$16 sps:$4 sm:$0xff]   ;;  %v5827_v53 = vld [vmem:[%s6742_s8 + $0x7ac] ss:$16 sps:$4 sm:$0xff]  }
 0x159   : > { %3617 = vmatpush1.bf16.msra.mxu0 %v5731_v18  ;;  %3945 = vmatpush1.bf16.msra.mxu1 %v5734_v19  ;;  %v5822_v18 = vld [vmem:[%s6742_s8 + $0x7a0] ss:$16 sps:$4 sm:$0xff]   ;;  %v5825_v19 = vld [vmem:[%s6742_s8 + $0x7a8] ss:$16 sps:$4 sm:$0xff]  }
 0x15a   : > { %3618 = vmatprep.subr.bf16.mxu0 %v5739_v20  ;;  %3946 = vmatprep.subr.bf16.mxu1 %v5742_v21  ;;  %v5830_v20 = vld [vmem:[%s6742_s8 + $0x7c4] ss:$16 sps:$4 sm:$0xff]   ;;  %v5833_v21 = vld [vmem:[%s6742_s8 + $0x7cc] ss:$16 sps:$4 sm:$0xff]  }
 0x15d   : > { %3619 = vmatpush1.bf16.msra.mxu0 %v5737_v22  ;;  %3947 = vmatpush1.bf16.msra.mxu1 %v5740_v23  ;;  %v7063_v22 = vld [vmem:[%s314_s9 + $0x8] sm:$0xff] }
 0x15e   : > { %3629 = vmatprep.subr.bf16.mxu0 %v5746_v24  ;;  %3957 = vmatprep.subr.bf16.mxu1 %v5749_v25  ;;  %v5828_v23 = vld [vmem:[%s6742_s8 + $0x7c0] ss:$16 sps:$4 sm:$0xff]   ;;  %v5831_v24 = vld [vmem:[%s6742_s8 + $0x7c8] ss:$16 sps:$4 sm:$0xff]   ;;  %v5836_v25 = vld [vmem:[%s6742_s8 + $0x7e4] ss:$16 sps:$4 sm:$0xff]  }
 0x160   : > { %3621 = vmatmul.mubr.bf16.vlgmr.msra.gmra.mrb[0].mxu0 %v7000_v14  ;;  %3949 = vmatmul.mubr.bf16.vlgmr.msra.gmra.mrb[0].mxu1 %v7000_v14 }
 0x161   : > { %3630 = vmatpush1.bf16.msra.mxu0 %v5744_v27  ;;  %3958 = vmatpush1.bf16.msra.mxu1 %v5747_v28  ;;  %v5839_v27 = vld [vmem:[%s6742_s8 + $0x7ec] ss:$16 sps:$4 sm:$0xff]   ;;  %v7071_v28 = vrot.slane %v7063_v22, %v6818_v50 }
 0x162   : > { %3631 = vmatprep.subr.bf16.mxu0 %v5752_v29  ;;  %3959 = vmatprep.subr.bf16.mxu1 %v5755_v30  ;;  %v5834_v29 = vld [vmem:[%s6742_s8 + $0x7e0] ss:$16 sps:$4 sm:$0xff]   ;;  %v5837_v30 = vld [vmem:[%s6742_s8 + $0x7e8] ss:$16 sps:$4 sm:$0xff]  }
 0x163   : > { %3661 = vmatprep.mubr.bf16.mxu0 %v880_v31  ;;  %3989 = vmatprep.mubr.bf16.mxu1 %v880_v31  ;;  %v5842_v31 = vld [vmem:[%s6742_s8 + $0x804] ss:$16 sps:$4 sm:$0xff]  }
 0x165   : > { %3632 = vmatpush1.bf16.msra.mxu0 %v5750_v16  ;;  %3960 = vmatpush1.bf16.msra.mxu1 %v5753_v32  ;;  %v5845_v16 = vld [vmem:[%s6742_s8 + $0x80c] ss:$16 sps:$4 sm:$0xff]   ;;  %v896_v32 = vcombine.high %v7071_v28, %v7071_v28 }
 0x166   : > { %3633 = vmatprep.subr.bf16.mxu0 %v5758_v33  ;;  %3961 = vmatprep.subr.bf16.mxu1 %v5761_v34  ;;  %v878_v33 = vcombine.high %v7000_v14, %v7000_v14  ;;  %v5840_v34 = vld [vmem:[%s6742_s8 + $0x800] ss:$16 sps:$4 sm:$0xff]  }
 0x167   : > { %v5846_v14 = vld [vmem:[%s6742_s8 + $0x820] ss:$16 sps:$4 sm:$0xff]  }
 0x169   : > { %3634 = vmatpush1.bf16.msra.mxu0 %v5756_v26  ;;  %3962 = vmatpush1.bf16.msra.mxu1 %v5759_v35  ;;  %v5843_v26 = vld [vmem:[%s6742_s8 + $0x808] ss:$16 sps:$4 sm:$0xff]   ;;  %v5848_v35 = vld [vmem:[%s6742_s8 + $0x824] ss:$16 sps:$4 sm:$0xff]  }
 0x16a   : > { %3635 = vmatprep.subr.bf16.mxu0 %v5764_v36  ;;  %3963 = vmatprep.subr.bf16.mxu1 %v5767_v37  ;;  %v5851_v36 = vld [vmem:[%s6742_s8 + $0x82c] ss:$16 sps:$4 sm:$0xff]   ;;  %v7086_v37 = vrot.slane %v896_v32, %v6818_v50  ;;  %v5927_v32 = vld [vmem:[%s6742_s8 + $0x9c8] ss:$16 sps:$4 sm:$0xff]  }
 0x16d   : > { %3636 = vmatpush1.bf16.msra.mxu0 %v5762_v38  ;;  %3964 = vmatpush1.bf16.msra.mxu1 %v5765_v39  ;;  %v5849_v38 = vld [vmem:[%s6742_s8 + $0x828] ss:$16 sps:$4 sm:$0xff]   ;;  %v5854_v39 = vld [vmem:[%s6742_s8 + $0x844] ss:$16 sps:$4 sm:$0xff]  }
 0x16e   : > { %3637 = vmatprep.subr.bf16.mxu0 %v5770_v40  ;;  %3965 = vmatprep.subr.bf16.mxu1 %v5773_v41  ;;  %v5857_v40 = vld [vmem:[%s6742_s8 + $0x84c] ss:$16 sps:$4 sm:$0xff]   ;;  %v5852_v41 = vld [vmem:[%s6742_s8 + $0x840] ss:$16 sps:$4 sm:$0xff]  }
 0x171   : > { %3638 = vmatpush1.bf16.msra.mxu0 %v5768_v42  ;;  %3966 = vmatpush1.bf16.msra.mxu1 %v5771_v43  ;;  %v5855_v42 = vld [vmem:[%s6742_s8 + $0x848] ss:$16 sps:$4 sm:$0xff]   ;;  %v5860_v43 = vld [vmem:[%s6742_s8 + $0x864] ss:$16 sps:$4 sm:$0xff]  }
 0x172   : > { %3639 = vmatprep.subr.bf16.mxu0 %v5776_v45  ;;  %3967 = vmatprep.subr.bf16.mxu1 %v5779_v46  ;;  %v5863_v45 = vld [vmem:[%s6742_s8 + $0x86c] ss:$16 sps:$4 sm:$0xff]   ;;  %v5858_v46 = vld [vmem:[%s6742_s8 + $0x860] ss:$16 sps:$4 sm:$0xff]  }
 0x175   : > { %3640 = vmatpush1.bf16.msra.mxu0 %v5774_v47  ;;  %3968 = vmatpush1.bf16.msra.mxu1 %v5777_v48  ;;  %v5861_v47 = vld [vmem:[%s6742_s8 + $0x868] ss:$16 sps:$4 sm:$0xff]   ;;  %v5866_v48 = vld [vmem:[%s6742_s8 + $0x884] ss:$16 sps:$4 sm:$0xff]  }
 0x176   : > { %3641 = vmatprep.subr.bf16.mxu0 %v5782_v49  ;;  %3969 = vmatprep.subr.bf16.mxu1 %v5785_v51  ;;  %v5869_v49 = vld [vmem:[%s6742_s8 + $0x88c] ss:$16 sps:$4 sm:$0xff]   ;;  %v5864_v51 = vld [vmem:[%s6742_s8 + $0x880] ss:$16 sps:$4 sm:$0xff]  }
 0x179   : > { %3642 = vmatpush1.bf16.msra.mxu0 %v5780_v52  ;;  %3970 = vmatpush1.bf16.msra.mxu1 %v5783_v54  ;;  %v5867_v52 = vld [vmem:[%s6742_s8 + $0x888] ss:$16 sps:$4 sm:$0xff]   ;;  %v5872_v54 = vld [vmem:[%s6742_s8 + $0x8a4] ss:$16 sps:$4 sm:$0xff]  }
 0x17a   : > { %3643 = vmatprep.subr.bf16.mxu0 %v5788_v55  ;;  %3971 = vmatprep.subr.bf16.mxu1 %v5791_v56  ;;  %v5875_v55 = vld [vmem:[%s6742_s8 + $0x8ac] ss:$16 sps:$4 sm:$0xff]   ;;  %v5870_v56 = vld [vmem:[%s6742_s8 + $0x8a0] ss:$16 sps:$4 sm:$0xff]  }
 0x17d   : > { %3644 = vmatpush1.bf16.msra.mxu0 %v5786_v57  ;;  %3972 = vmatpush1.bf16.msra.mxu1 %v5789_v58  ;;  %v5873_v57 = vld [vmem:[%s6742_s8 + $0x8a8] ss:$16 sps:$4 sm:$0xff]   ;;  %v5878_v58 = vld [vmem:[%s6742_s8 + $0x8c4] ss:$16 sps:$4 sm:$0xff]  }
 0x17e   : > { %3645 = vmatprep.subr.bf16.mxu0 %v5794_v59  ;;  %3973 = vmatprep.subr.bf16.mxu1 %v5797_v60  ;;  %v5881_v59 = vld [vmem:[%s6742_s8 + $0x8cc] ss:$16 sps:$4 sm:$0xff]   ;;  %v5876_v60 = vld [vmem:[%s6742_s8 + $0x8c0] ss:$16 sps:$4 sm:$0xff]  }
 0x181   : > { %3646 = vmatpush1.bf16.msra.mxu0 %v5792_v61  ;;  %3974 = vmatpush1.bf16.msra.mxu1 %v5795_v62  ;;  %v5879_v61 = vld [vmem:[%s6742_s8 + $0x8c8] ss:$16 sps:$4 sm:$0xff]   ;;  %v5884_v62 = vld [vmem:[%s6742_s8 + $0x8e4] ss:$16 sps:$4 sm:$0xff]  }
 0x182   : > { %3647 = vmatprep.subr.bf16.mxu0 %v5800_v63  ;;  %3975 = vmatprep.subr.bf16.mxu1 %v5803_v0  ;;  %v5887_v63 = vld [vmem:[%s6742_s8 + $0x8ec] ss:$16 sps:$4 sm:$0xff]   ;;  %v5882_v0 = vld [vmem:[%s6742_s8 + $0x8e0] ss:$16 sps:$4 sm:$0xff]  }
 0x185   : > { %3648 = vmatpush1.bf16.msra.mxu0 %v5798_v1  ;;  %3976 = vmatpush1.bf16.msra.mxu1 %v5801_v2  ;;  %v5885_v1 = vld [vmem:[%s6742_s8 + $0x8e8] ss:$16 sps:$4 sm:$0xff]   ;;  %v5890_v2 = vld [vmem:[%s6742_s8 + $0x904] ss:$16 sps:$4 sm:$0xff]  }
 0x186   : > { %3649 = vmatprep.subr.bf16.mxu0 %v5806_v3  ;;  %3977 = vmatprep.subr.bf16.mxu1 %v5809_v4  ;;  %v5893_v3 = vld [vmem:[%s6742_s8 + $0x90c] ss:$16 sps:$4 sm:$0xff]   ;;  %v5888_v4 = vld [vmem:[%s6742_s8 + $0x900] ss:$16 sps:$4 sm:$0xff]  }
 0x189   : > { %3650 = vmatpush1.bf16.msra.mxu0 %v5804_v5  ;;  %3978 = vmatpush1.bf16.msra.mxu1 %v5807_v6  ;;  %v5891_v5 = vld [vmem:[%s6742_s8 + $0x908] ss:$16 sps:$4 sm:$0xff]   ;;  %v5896_v6 = vld [vmem:[%s6742_s8 + $0x924] ss:$16 sps:$4 sm:$0xff]  }
 0x18a   : > { %3651 = vmatprep.subr.bf16.mxu0 %v5812_v7  ;;  %3979 = vmatprep.subr.bf16.mxu1 %v5815_v8  ;;  %v5899_v7 = vld [vmem:[%s6742_s8 + $0x92c] ss:$16 sps:$4 sm:$0xff]   ;;  %v5894_v8 = vld [vmem:[%s6742_s8 + $0x920] ss:$16 sps:$4 sm:$0xff]  }
 0x18d   : > { %3652 = vmatpush1.bf16.msra.mxu0 %v5810_v9  ;;  %3980 = vmatpush1.bf16.msra.mxu1 %v5813_v10  ;;  %v5897_v9 = vld [vmem:[%s6742_s8 + $0x928] ss:$16 sps:$4 sm:$0xff]   ;;  %v5902_v10 = vld [vmem:[%s6742_s8 + $0x944] ss:$16 sps:$4 sm:$0xff]  }
 0x18e   : > { %3653 = vmatprep.subr.bf16.mxu0 %v5818_v11  ;;  %3981 = vmatprep.subr.bf16.mxu1 %v5821_v12  ;;  %v5905_v11 = vld [vmem:[%s6742_s8 + $0x94c] ss:$16 sps:$4 sm:$0xff]   ;;  %v5900_v12 = vld [vmem:[%s6742_s8 + $0x940] ss:$16 sps:$4 sm:$0xff]  }
 0x191   : > { %3654 = vmatpush1.bf16.msra.mxu0 %v5816_v13  ;;  %3982 = vmatpush1.bf16.msra.mxu1 %v5819_v15  ;;  %v5903_v13 = vld [vmem:[%s6742_s8 + $0x948] ss:$16 sps:$4 sm:$0xff]   ;;  %v5908_v15 = vld [vmem:[%s6742_s8 + $0x964] ss:$16 sps:$4 sm:$0xff]  }
 0x192   : > { %3655 = vmatprep.subr.bf16.mxu0 %v5824_v17  ;;  %3983 = vmatprep.subr.bf16.mxu1 %v5827_v53  ;;  %v5911_v17 = vld [vmem:[%s6742_s8 + $0x96c] ss:$16 sps:$4 sm:$0xff]   ;;  %v5906_v53 = vld [vmem:[%s6742_s8 + $0x960] ss:$16 sps:$4 sm:$0xff]  }
 0x195   : > { %3656 = vmatpush1.bf16.msra.mxu0 %v5822_v18  ;;  %3984 = vmatpush1.bf16.msra.mxu1 %v5825_v19  ;;  %v5909_v18 = vld [vmem:[%s6742_s8 + $0x968] ss:$16 sps:$4 sm:$0xff]   ;;  %v5914_v19 = vld [vmem:[%s6742_s8 + $0x984] ss:$16 sps:$4 sm:$0xff]  }
 0x196   : > { %3657 = vmatprep.subr.bf16.mxu0 %v5830_v20  ;;  %3985 = vmatprep.subr.bf16.mxu1 %v5833_v21  ;;  %v5917_v20 = vld [vmem:[%s6742_s8 + $0x98c] ss:$16 sps:$4 sm:$0xff]   ;;  %v5912_v21 = vld [vmem:[%s6742_s8 + $0x980] ss:$16 sps:$4 sm:$0xff]  }
 0x199   : > { %3658 = vmatpush1.bf16.msra.mxu0 %v5828_v23  ;;  %3986 = vmatpush1.bf16.msra.mxu1 %v5831_v24  ;;  %v5915_v23 = vld [vmem:[%s6742_s8 + $0x988] ss:$16 sps:$4 sm:$0xff]   ;;  %v5920_v24 = vld [vmem:[%s6742_s8 + $0x9a4] ss:$16 sps:$4 sm:$0xff]  }
 0x19a   : > { %3659 = vmatprep.subr.bf16.mxu0 %v5836_v25  ;;  %3987 = vmatprep.subr.bf16.mxu1 %v5839_v27  ;;  %v5923_v25 = vld [vmem:[%s6742_s8 + $0x9ac] ss:$16 sps:$4 sm:$0xff]   ;;  %v5918_v27 = vld [vmem:[%s6742_s8 + $0x9a0] ss:$16 sps:$4 sm:$0xff]  }
 0x19d   : > { %3660 = vmatpush1.bf16.msra.mxu0 %v5834_v29  ;;  %3988 = vmatpush1.bf16.msra.mxu1 %v5837_v30  ;;  %v5921_v29 = vld [vmem:[%s6742_s8 + $0x9a8] ss:$16 sps:$4 sm:$0xff]   ;;  %v5926_v30 = vld [vmem:[%s6742_s8 + $0x9c4] ss:$16 sps:$4 sm:$0xff]  }
 0x19e   : > { %3670 = vmatprep.subr.bf16.mxu0 %v5842_v31  ;;  %3998 = vmatprep.subr.bf16.mxu1 %v5845_v16  ;;  %v5929_v31 = vld [vmem:[%s6742_s8 + $0x9cc] ss:$16 sps:$4 sm:$0xff]   ;;  %v5924_v16 = vld [vmem:[%s6742_s8 + $0x9c0] ss:$16 sps:$4 sm:$0xff]  }
 0x1a0   : > { %3662 = vmatmul.mubr.bf16.vlgmr.msra.gmra.mrb[0].mxu0 %v878_v33  ;;  %3990 = vmatmul.mubr.bf16.vlgmr.msra.gmra.mrb[0].mxu1 %v878_v33  ;;  %v5932_v33 = vld [vmem:[%s6742_s8 + $0x9e4] ss:$16 sps:$4 sm:$0xff]  }
 0x1a1   : > { %3671 = vmatpush1.bf16.msra.mxu0 %v5840_v34  ;;  %3999 = vmatpush1.bf16.msra.mxu1 %v5843_v26  ;;  %v5935_v34 = vld [vmem:[%s6742_s8 + $0x9ec] ss:$16 sps:$4 sm:$0xff]   ;;  %v5930_v26 = vld [vmem:[%s6742_s8 + $0x9e0] ss:$16 sps:$4 sm:$0xff]  }
 0x1a2   : > { %3672 = vmatprep.subr.bf16.mxu0 %v5848_v35  ;;  %4000 = vmatprep.subr.bf16.mxu1 %v5851_v36  ;;  %v5933_v35 = vld [vmem:[%s6742_s8 + $0x9e8] ss:$16 sps:$4 sm:$0xff]   ;;  %v5938_v36 = vld [vmem:[%s6742_s8 + $0xa04] ss:$16 sps:$4 sm:$0xff]  }
 0x1a3   : > { %3702 = vmatprep.mubr.bf16.mxu0 %v7086_v37  ;;  %4030 = vmatprep.mubr.bf16.mxu1 %v7086_v37 }
 0x1a5   : > { %3673 = vmatpush1.bf16.msra.mxu0 %v5846_v14  ;;  %4001 = vmatpush1.bf16.msra.mxu1 %v5849_v38  ;;  %v5941_v14 = vld [vmem:[%s6742_s8 + $0xa0c] ss:$16 sps:$4 sm:$0xff]   ;;  %v7152_v38 = vrot.slane %v7071_v28, %v6818_v50  ;;  %v5942_v28 = vld [vmem:[%s6742_s8 + $0xa20] ss:$16 sps:$4 sm:$0xff]  }
 0x1a6   : > { %3674 = vmatprep.subr.bf16.mxu0 %v5854_v39  ;;  %4002 = vmatprep.subr.bf16.mxu1 %v5857_v40  ;;  %v5936_v39 = vld [vmem:[%s6742_s8 + $0xa00] ss:$16 sps:$4 sm:$0xff]   ;;  %v5939_v40 = vld [vmem:[%s6742_s8 + $0xa08] ss:$16 sps:$4 sm:$0xff]  }
 0x1a9   : > { %3675 = vmatpush1.bf16.msra.mxu0 %v5852_v41  ;;  %4003 = vmatpush1.bf16.msra.mxu1 %v5855_v42  ;;  %v5944_v41 = vld [vmem:[%s6742_s8 + $0xa24] ss:$16 sps:$4 sm:$0xff]   ;;  %v5947_v42 = vld [vmem:[%s6742_s8 + $0xa2c] ss:$16 sps:$4 sm:$0xff]  }
 0x1aa   : > { %3676 = vmatprep.subr.bf16.mxu0 %v5860_v43  ;;  %4004 = vmatprep.subr.bf16.mxu1 %v5863_v45  ;;  %v928_v43 = vcombine.high %v7086_v37, %v7086_v37  ;;  %v5945_v45 = vld [vmem:[%s6742_s8 + $0xa28] ss:$16 sps:$4 sm:$0xff]   ;;  %v5948_v37 = vld [vmem:[%s6742_s8 + $0xa40] ss:$16 sps:$4 sm:$0xff]  }
 0x1ad   : > { %3677 = vmatpush1.bf16.msra.mxu0 %v5858_v46  ;;  %4005 = vmatpush1.bf16.msra.mxu1 %v5861_v47  ;;  %v5950_v46 = vld [vmem:[%s6742_s8 + $0xa44] ss:$16 sps:$4 sm:$0xff]   ;;  %v5953_v47 = vld [vmem:[%s6742_s8 + $0xa4c] ss:$16 sps:$4 sm:$0xff]  }
 0x1ae   : > { %3678 = vmatprep.subr.bf16.mxu0 %v5866_v48  ;;  %4006 = vmatprep.subr.bf16.mxu1 %v5869_v49  ;;  %v5951_v48 = vld [vmem:[%s6742_s8 + $0xa48] ss:$16 sps:$4 sm:$0xff]   ;;  %v5956_v49 = vld [vmem:[%s6742_s8 + $0xa64] ss:$16 sps:$4 sm:$0xff]  }
 0x1b1   : > { %3679 = vmatpush1.bf16.msra.mxu0 %v5864_v51  ;;  %4007 = vmatpush1.bf16.msra.mxu1 %v5867_v52  ;;  %v5959_v51 = vld [vmem:[%s6742_s8 + $0xa6c] ss:$16 sps:$4 sm:$0xff]   ;;  %v5954_v52 = vld [vmem:[%s6742_s8 + $0xa60] ss:$16 sps:$4 sm:$0xff]  }
 0x1b2   : > { %3680 = vmatprep.subr.bf16.mxu0 %v5872_v54  ;;  %4008 = vmatprep.subr.bf16.mxu1 %v5875_v55  ;;  %v5957_v54 = vld [vmem:[%s6742_s8 + $0xa68] ss:$16 sps:$4 sm:$0xff]   ;;  %v5962_v55 = vld [vmem:[%s6742_s8 + $0xa84] ss:$16 sps:$4 sm:$0xff]  }
 0x1b5   : > { %3681 = vmatpush1.bf16.msra.mxu0 %v5870_v56  ;;  %4009 = vmatpush1.bf16.msra.mxu1 %v5873_v57  ;;  %v5965_v56 = vld [vmem:[%s6742_s8 + $0xa8c] ss:$16 sps:$4 sm:$0xff]   ;;  %v5960_v57 = vld [vmem:[%s6742_s8 + $0xa80] ss:$16 sps:$4 sm:$0xff]  }
 0x1b6   : > { %3682 = vmatprep.subr.bf16.mxu0 %v5878_v58  ;;  %4010 = vmatprep.subr.bf16.mxu1 %v5881_v59  ;;  %v5963_v58 = vld [vmem:[%s6742_s8 + $0xa88] ss:$16 sps:$4 sm:$0xff]   ;;  %v5968_v59 = vld [vmem:[%s6742_s8 + $0xaa4] ss:$16 sps:$4 sm:$0xff]  }
 0x1b9   : > { %3683 = vmatpush1.bf16.msra.mxu0 %v5876_v60  ;;  %4011 = vmatpush1.bf16.msra.mxu1 %v5879_v61  ;;  %v5971_v60 = vld [vmem:[%s6742_s8 + $0xaac] ss:$16 sps:$4 sm:$0xff]   ;;  %v5966_v61 = vld [vmem:[%s6742_s8 + $0xaa0] ss:$16 sps:$4 sm:$0xff]  }
 0x1ba   : > { %3684 = vmatprep.subr.bf16.mxu0 %v5884_v62  ;;  %4012 = vmatprep.subr.bf16.mxu1 %v5887_v63  ;;  %v5969_v62 = vld [vmem:[%s6742_s8 + $0xaa8] ss:$16 sps:$4 sm:$0xff]   ;;  %v5974_v63 = vld [vmem:[%s6742_s8 + $0xac4] ss:$16 sps:$4 sm:$0xff]  }
 0x1bd   : > { %3685 = vmatpush1.bf16.msra.mxu0 %v5882_v0  ;;  %4013 = vmatpush1.bf16.msra.mxu1 %v5885_v1  ;;  %v5977_v0 = vld [vmem:[%s6742_s8 + $0xacc] ss:$16 sps:$4 sm:$0xff]   ;;  %v5972_v1 = vld [vmem:[%s6742_s8 + $0xac0] ss:$16 sps:$4 sm:$0xff]  }
 0x1be   : > { %3686 = vmatprep.subr.bf16.mxu0 %v5890_v2  ;;  %4014 = vmatprep.subr.bf16.mxu1 %v5893_v3  ;;  %v5975_v2 = vld [vmem:[%s6742_s8 + $0xac8] ss:$16 sps:$4 sm:$0xff]   ;;  %v5980_v3 = vld [vmem:[%s6742_s8 + $0xae4] ss:$16 sps:$4 sm:$0xff]  }
 0x1c1   : > { %3687 = vmatpush1.bf16.msra.mxu0 %v5888_v4  ;;  %4015 = vmatpush1.bf16.msra.mxu1 %v5891_v5  ;;  %v5983_v4 = vld [vmem:[%s6742_s8 + $0xaec] ss:$16 sps:$4 sm:$0xff]   ;;  %v5978_v5 = vld [vmem:[%s6742_s8 + $0xae0] ss:$16 sps:$4 sm:$0xff]  }
 0x1c2   : > { %3688 = vmatprep.subr.bf16.mxu0 %v5896_v6  ;;  %4016 = vmatprep.subr.bf16.mxu1 %v5899_v7  ;;  %v5981_v6 = vld [vmem:[%s6742_s8 + $0xae8] ss:$16 sps:$4 sm:$0xff]   ;;  %v5986_v7 = vld [vmem:[%s6742_s8 + $0xb04] ss:$16 sps:$4 sm:$0xff]  }
 0x1c5   : > { %3689 = vmatpush1.bf16.msra.mxu0 %v5894_v8  ;;  %4017 = vmatpush1.bf16.msra.mxu1 %v5897_v9  ;;  %v5989_v8 = vld [vmem:[%s6742_s8 + $0xb0c] ss:$16 sps:$4 sm:$0xff]   ;;  %v5984_v9 = vld [vmem:[%s6742_s8 + $0xb00] ss:$16 sps:$4 sm:$0xff]  }
 0x1c6   : > { %3690 = vmatprep.subr.bf16.mxu0 %v5902_v10  ;;  %4018 = vmatprep.subr.bf16.mxu1 %v5905_v11  ;;  %v5987_v10 = vld [vmem:[%s6742_s8 + $0xb08] ss:$16 sps:$4 sm:$0xff]   ;;  %v5992_v11 = vld [vmem:[%s6742_s8 + $0xb24] ss:$16 sps:$4 sm:$0xff]  }
 0x1c9   : > { %3691 = vmatpush1.bf16.msra.mxu0 %v5900_v12  ;;  %4019 = vmatpush1.bf16.msra.mxu1 %v5903_v13  ;;  %v5995_v12 = vld [vmem:[%s6742_s8 + $0xb2c] ss:$16 sps:$4 sm:$0xff]   ;;  %v5990_v13 = vld [vmem:[%s6742_s8 + $0xb20] ss:$16 sps:$4 sm:$0xff]  }
 0x1ca   : > { %3692 = vmatprep.subr.bf16.mxu0 %v5908_v15  ;;  %4020 = vmatprep.subr.bf16.mxu1 %v5911_v17  ;;  %v5993_v15 = vld [vmem:[%s6742_s8 + $0xb28] ss:$16 sps:$4 sm:$0xff]   ;;  %v5998_v17 = vld [vmem:[%s6742_s8 + $0xb44] ss:$16 sps:$4 sm:$0xff]  }
 0x1cd   : > { %3693 = vmatpush1.bf16.msra.mxu0 %v5906_v53  ;;  %4021 = vmatpush1.bf16.msra.mxu1 %v5909_v18  ;;  %v6001_v53 = vld [vmem:[%s6742_s8 + $0xb4c] ss:$16 sps:$4 sm:$0xff]   ;;  %v5996_v18 = vld [vmem:[%s6742_s8 + $0xb40] ss:$16 sps:$4 sm:$0xff]  }
 0x1ce   : > { %3694 = vmatprep.subr.bf16.mxu0 %v5914_v19  ;;  %4022 = vmatprep.subr.bf16.mxu1 %v5917_v20  ;;  %v5999_v19 = vld [vmem:[%s6742_s8 + $0xb48] ss:$16 sps:$4 sm:$0xff]   ;;  %v6004_v20 = vld [vmem:[%s6742_s8 + $0xb64] ss:$16 sps:$4 sm:$0xff]  }
 0x1d1   : > { %3695 = vmatpush1.bf16.msra.mxu0 %v5912_v21  ;;  %4023 = vmatpush1.bf16.msra.mxu1 %v5915_v23  ;;  %v6007_v21 = vld [vmem:[%s6742_s8 + $0xb6c] ss:$16 sps:$4 sm:$0xff]   ;;  %v6002_v23 = vld [vmem:[%s6742_s8 + $0xb60] ss:$16 sps:$4 sm:$0xff]  }
 0x1d2   : > { %3696 = vmatprep.subr.bf16.mxu0 %v5920_v24  ;;  %4024 = vmatprep.subr.bf16.mxu1 %v5923_v25  ;;  %v6005_v24 = vld [vmem:[%s6742_s8 + $0xb68] ss:$16 sps:$4 sm:$0xff]   ;;  %v6010_v25 = vld [vmem:[%s6742_s8 + $0xb84] ss:$16 sps:$4 sm:$0xff]  }
 0x1d5   : > { %3697 = vmatpush1.bf16.msra.mxu0 %v5918_v27  ;;  %4025 = vmatpush1.bf16.msra.mxu1 %v5921_v29  ;;  %v6013_v27 = vld [vmem:[%s6742_s8 + $0xb8c] ss:$16 sps:$4 sm:$0xff]   ;;  %v6008_v29 = vld [vmem:[%s6742_s8 + $0xb80] ss:$16 sps:$4 sm:$0xff]  }
 0x1d6   : > { %3698 = vmatprep.subr.bf16.mxu0 %v5926_v30  ;;  %4026 = vmatprep.subr.bf16.mxu1 %v5929_v31  ;;  %v6011_v30 = vld [vmem:[%s6742_s8 + $0xb88] ss:$16 sps:$4 sm:$0xff]   ;;  %v6016_v31 = vld [vmem:[%s6742_s8 + $0xba4] ss:$16 sps:$4 sm:$0xff]  }
 0x1d9   : > { %3699 = vmatpush1.bf16.msra.mxu0 %v5924_v16  ;;  %4027 = vmatpush1.bf16.msra.mxu1 %v5927_v32  ;;  %v6019_v16 = vld [vmem:[%s6742_s8 + $0xbac] ss:$16 sps:$4 sm:$0xff]   ;;  %v6014_v32 = vld [vmem:[%s6742_s8 + $0xba0] ss:$16 sps:$4 sm:$0xff]  }
 0x1da   : > { %3700 = vmatprep.subr.bf16.mxu0 %v5932_v33  ;;  %4028 = vmatprep.subr.bf16.mxu1 %v5935_v34  ;;  %v6017_v33 = vld [vmem:[%s6742_s8 + $0xba8] ss:$16 sps:$4 sm:$0xff]   ;;  %v6022_v34 = vld [vmem:[%s6742_s8 + $0xbc4] ss:$16 sps:$4 sm:$0xff]  }
 0x1dd   : > { %3701 = vmatpush1.bf16.msra.mxu0 %v5930_v26  ;;  %4029 = vmatpush1.bf16.msra.mxu1 %v5933_v35  ;;  %v6025_v26 = vld [vmem:[%s6742_s8 + $0xbcc] ss:$16 sps:$4 sm:$0xff]   ;;  %v881_v35 = vcombine.high %v7063_v22, %v7063_v22  ;;  %v6026_v22 = vld [vmem:[%s6742_s8 + $0xbe0] ss:$16 sps:$4 sm:$0xff]  }
 0x1de   : > { %3711 = vmatprep.subr.bf16.mxu0 %v5938_v36  ;;  %4039 = vmatprep.subr.bf16.mxu1 %v5941_v14  ;;  %v6020_v36 = vld [vmem:[%s6742_s8 + $0xbc0] ss:$16 sps:$4 sm:$0xff]   ;;  %v6023_v14 = vld [vmem:[%s6742_s8 + $0xbc8] ss:$16 sps:$4 sm:$0xff]  }
 0x1e0   : > { %3703 = vmatmul.mubr.bf16.vlgmr.msra.gmra.mrb[0].mxu0 %v7152_v38  ;;  %4031 = vmatmul.mubr.bf16.vlgmr.msra.gmra.mrb[0].mxu1 %v7152_v38 }
 0x1e1   : > { %3712 = vmatpush1.bf16.msra.mxu0 %v5936_v39  ;;  %4040 = vmatpush1.bf16.msra.mxu1 %v5939_v40  ;;  %v6028_v39 = vld [vmem:[%s6742_s8 + $0xbe4] ss:$16 sps:$4 sm:$0xff]   ;;  %v6031_v40 = vld [vmem:[%s6742_s8 + $0xbec] ss:$16 sps:$4 sm:$0xff]  }
 0x1e2   : > { %3713 = vmatprep.subr.bf16.mxu0 %v5944_v41  ;;  %4041 = vmatprep.subr.bf16.mxu1 %v5947_v42  ;;  %v7221_v41 = vrot.slane %v881_v35, %v6818_v50  ;;  %v6029_v42 = vld [vmem:[%s6742_s8 + $0xbe8] ss:$16 sps:$4 sm:$0xff]  }
 0x1e3   : > { %3743 = vmatprep.mubr.bf16.mxu0 %v928_v43  ;;  %4071 = vmatprep.mubr.bf16.mxu1 %v928_v43  ;;  %v6034_v43 = vld [vmem:[%s6742_s8 + $0xc04] ss:$16 sps:$4 sm:$0xff]   ;;  %v6107_v35 = vld [vmem:[%s6742_s8 + $0xd88] ss:$16 sps:$4 sm:$0xff]  }
 0x1e5   : > { %3714 = vmatpush1.bf16.msra.mxu0 %v5942_v28  ;;  %4042 = vmatpush1.bf16.msra.mxu1 %v5945_v45  ;;  %v6037_v28 = vld [vmem:[%s6742_s8 + $0xc0c] ss:$16 sps:$4 sm:$0xff]   ;;  %v897_v45 = vcombine.high %v7221_v41, %v7221_v41 }
 0x1e6   : > { %3715 = vmatprep.subr.bf16.mxu0 %v5950_v46  ;;  %4043 = vmatprep.subr.bf16.mxu1 %v5953_v47  ;;  %v926_v46 = vcombine.high %v7152_v38, %v7152_v38  ;;  %v6032_v47 = vld [vmem:[%s6742_s8 + $0xc00] ss:$16 sps:$4 sm:$0xff]  }
 0x1e7   : > { %v6038_v38 = vld [vmem:[%s6742_s8 + $0xc20] ss:$16 sps:$4 sm:$0xff]  }
 0x1e9   : > { %3716 = vmatpush1.bf16.msra.mxu0 %v5948_v37  ;;  %4044 = vmatpush1.bf16.msra.mxu1 %v5951_v48  ;;  %v6035_v37 = vld [vmem:[%s6742_s8 + $0xc08] ss:$16 sps:$4 sm:$0xff]   ;;  %v6040_v48 = vld [vmem:[%s6742_s8 + $0xc24] ss:$16 sps:$4 sm:$0xff]  }
 0x1ea   : > { %3717 = vmatprep.subr.bf16.mxu0 %v5956_v49  ;;  %4045 = vmatprep.subr.bf16.mxu1 %v5959_v51  ;;  %v6043_v49 = vld [vmem:[%s6742_s8 + $0xc2c] ss:$16 sps:$4 sm:$0xff]   ;;  %v7236_v51 = vrot.slane %v897_v45, %v6818_v50  ;;  %v6124_v45 = vld [vmem:[%s6742_s8 + $0xde4] ss:$16 sps:$4 sm:$0xff]  }
 0x1ed   : > { %3718 = vmatpush1.bf16.msra.mxu0 %v5954_v52  ;;  %4046 = vmatpush1.bf16.msra.mxu1 %v5957_v54  ;;  %v6041_v52 = vld [vmem:[%s6742_s8 + $0xc28] ss:$16 sps:$4 sm:$0xff]   ;;  %v6046_v54 = vld [vmem:[%s6742_s8 + $0xc44] ss:$16 sps:$4 sm:$0xff]  }
 0x1ee   : > { %3719 = vmatprep.subr.bf16.mxu0 %v5962_v55  ;;  %4047 = vmatprep.subr.bf16.mxu1 %v5965_v56  ;;  %v6049_v55 = vld [vmem:[%s6742_s8 + $0xc4c] ss:$16 sps:$4 sm:$0xff]   ;;  %v6044_v56 = vld [vmem:[%s6742_s8 + $0xc40] ss:$16 sps:$4 sm:$0xff]  }
 0x1f1   : > { %3720 = vmatpush1.bf16.msra.mxu0 %v5960_v57  ;;  %4048 = vmatpush1.bf16.msra.mxu1 %v5963_v58  ;;  %v6047_v57 = vld [vmem:[%s6742_s8 + $0xc48] ss:$16 sps:$4 sm:$0xff]   ;;  %v6052_v58 = vld [vmem:[%s6742_s8 + $0xc64] ss:$16 sps:$4 sm:$0xff]  }
 0x1f2   : > { %3721 = vmatprep.subr.bf16.mxu0 %v5968_v59  ;;  %4049 = vmatprep.subr.bf16.mxu1 %v5971_v60  ;;  %v6055_v59 = vld [vmem:[%s6742_s8 + $0xc6c] ss:$16 sps:$4 sm:$0xff]   ;;  %v6050_v60 = vld [vmem:[%s6742_s8 + $0xc60] ss:$16 sps:$4 sm:$0xff]  }
 0x1f5   : > { %3722 = vmatpush1.bf16.msra.mxu0 %v5966_v61  ;;  %4050 = vmatpush1.bf16.msra.mxu1 %v5969_v62  ;;  %v6053_v61 = vld [vmem:[%s6742_s8 + $0xc68] ss:$16 sps:$4 sm:$0xff]   ;;  %v6058_v62 = vld [vmem:[%s6742_s8 + $0xc84] ss:$16 sps:$4 sm:$0xff]  }
 0x1f6   : > { %3723 = vmatprep.subr.bf16.mxu0 %v5974_v63  ;;  %4051 = vmatprep.subr.bf16.mxu1 %v5977_v0  ;;  %v6061_v63 = vld [vmem:[%s6742_s8 + $0xc8c] ss:$16 sps:$4 sm:$0xff]   ;;  %v6056_v0 = vld [vmem:[%s6742_s8 + $0xc80] ss:$16 sps:$4 sm:$0xff]  }
 0x1f9   : > { %3724 = vmatpush1.bf16.msra.mxu0 %v5972_v1  ;;  %4052 = vmatpush1.bf16.msra.mxu1 %v5975_v2  ;;  %v6059_v1 = vld [vmem:[%s6742_s8 + $0xc88] ss:$16 sps:$4 sm:$0xff]   ;;  %v6064_v2 = vld [vmem:[%s6742_s8 + $0xca4] ss:$16 sps:$4 sm:$0xff]  }
 0x1fa   : > { %3725 = vmatprep.subr.bf16.mxu0 %v5980_v3  ;;  %4053 = vmatprep.subr.bf16.mxu1 %v5983_v4  ;;  %v6067_v3 = vld [vmem:[%s6742_s8 + $0xcac] ss:$16 sps:$4 sm:$0xff]   ;;  %v6062_v4 = vld [vmem:[%s6742_s8 + $0xca0] ss:$16 sps:$4 sm:$0xff]  }
 0x1fd   : > { %3726 = vmatpush1.bf16.msra.mxu0 %v5978_v5  ;;  %4054 = vmatpush1.bf16.msra.mxu1 %v5981_v6  ;;  %v6065_v5 = vld [vmem:[%s6742_s8 + $0xca8] ss:$16 sps:$4 sm:$0xff]   ;;  %v6070_v6 = vld [vmem:[%s6742_s8 + $0xcc4] ss:$16 sps:$4 sm:$0xff]  }
 0x1fe   : > { %3727 = vmatprep.subr.bf16.mxu0 %v5986_v7  ;;  %4055 = vmatprep.subr.bf16.mxu1 %v5989_v8  ;;  %v6073_v7 = vld [vmem:[%s6742_s8 + $0xccc] ss:$16 sps:$4 sm:$0xff]   ;;  %v6068_v8 = vld [vmem:[%s6742_s8 + $0xcc0] ss:$16 sps:$4 sm:$0xff]  }
 0x201   : > { %3728 = vmatpush1.bf16.msra.mxu0 %v5984_v9  ;;  %4056 = vmatpush1.bf16.msra.mxu1 %v5987_v10  ;;  %v6071_v9 = vld [vmem:[%s6742_s8 + $0xcc8] ss:$16 sps:$4 sm:$0xff]   ;;  %v6076_v10 = vld [vmem:[%s6742_s8 + $0xce4] ss:$16 sps:$4 sm:$0xff]  }
 0x202   : > { %3729 = vmatprep.subr.bf16.mxu0 %v5992_v11  ;;  %4057 = vmatprep.subr.bf16.mxu1 %v5995_v12  ;;  %v6079_v11 = vld [vmem:[%s6742_s8 + $0xcec] ss:$16 sps:$4 sm:$0xff]   ;;  %v6074_v12 = vld [vmem:[%s6742_s8 + $0xce0] ss:$16 sps:$4 sm:$0xff]  }
 0x205   : > { %3730 = vmatpush1.bf16.msra.mxu0 %v5990_v13  ;;  %4058 = vmatpush1.bf16.msra.mxu1 %v5993_v15  ;;  %v6077_v13 = vld [vmem:[%s6742_s8 + $0xce8] ss:$16 sps:$4 sm:$0xff]   ;;  %v6082_v15 = vld [vmem:[%s6742_s8 + $0xd04] ss:$16 sps:$4 sm:$0xff]  }
 0x206   : > { %3731 = vmatprep.subr.bf16.mxu0 %v5998_v17  ;;  %4059 = vmatprep.subr.bf16.mxu1 %v6001_v53  ;;  %v6085_v17 = vld [vmem:[%s6742_s8 + $0xd0c] ss:$16 sps:$4 sm:$0xff]   ;;  %v6080_v53 = vld [vmem:[%s6742_s8 + $0xd00] ss:$16 sps:$4 sm:$0xff]  }
 0x209   : > { %3732 = vmatpush1.bf16.msra.mxu0 %v5996_v18  ;;  %4060 = vmatpush1.bf16.msra.mxu1 %v5999_v19  ;;  %v6083_v18 = vld [vmem:[%s6742_s8 + $0xd08] ss:$16 sps:$4 sm:$0xff]   ;;  %v6088_v19 = vld [vmem:[%s6742_s8 + $0xd24] ss:$16 sps:$4 sm:$0xff]  }
 0x20a   : > { %3733 = vmatprep.subr.bf16.mxu0 %v6004_v20  ;;  %4061 = vmatprep.subr.bf16.mxu1 %v6007_v21  ;;  %v6091_v20 = vld [vmem:[%s6742_s8 + $0xd2c] ss:$16 sps:$4 sm:$0xff]   ;;  %v6086_v21 = vld [vmem:[%s6742_s8 + $0xd20] ss:$16 sps:$4 sm:$0xff]  }
 0x20d   : > { %3734 = vmatpush1.bf16.msra.mxu0 %v6002_v23  ;;  %4062 = vmatpush1.bf16.msra.mxu1 %v6005_v24  ;;  %v6089_v23 = vld [vmem:[%s6742_s8 + $0xd28] ss:$16 sps:$4 sm:$0xff]   ;;  %v6094_v24 = vld [vmem:[%s6742_s8 + $0xd44] ss:$16 sps:$4 sm:$0xff]  }
 0x20e   : > { %3735 = vmatprep.subr.bf16.mxu0 %v6010_v25  ;;  %4063 = vmatprep.subr.bf16.mxu1 %v6013_v27  ;;  %v6097_v25 = vld [vmem:[%s6742_s8 + $0xd4c] ss:$16 sps:$4 sm:$0xff]   ;;  %v6092_v27 = vld [vmem:[%s6742_s8 + $0xd40] ss:$16 sps:$4 sm:$0xff]  }
 0x211   : > { %3736 = vmatpush1.bf16.msra.mxu0 %v6008_v29  ;;  %4064 = vmatpush1.bf16.msra.mxu1 %v6011_v30  ;;  %v6095_v29 = vld [vmem:[%s6742_s8 + $0xd48] ss:$16 sps:$4 sm:$0xff]   ;;  %v6100_v30 = vld [vmem:[%s6742_s8 + $0xd64] ss:$16 sps:$4 sm:$0xff]  }
 0x212   : > { %3737 = vmatprep.subr.bf16.mxu0 %v6016_v31  ;;  %4065 = vmatprep.subr.bf16.mxu1 %v6019_v16  ;;  %v6103_v31 = vld [vmem:[%s6742_s8 + $0xd6c] ss:$16 sps:$4 sm:$0xff]   ;;  %v6098_v16 = vld [vmem:[%s6742_s8 + $0xd60] ss:$16 sps:$4 sm:$0xff]  }
 0x215   : > { %3738 = vmatpush1.bf16.msra.mxu0 %v6014_v32  ;;  %4066 = vmatpush1.bf16.msra.mxu1 %v6017_v33  ;;  %v6101_v32 = vld [vmem:[%s6742_s8 + $0xd68] ss:$16 sps:$4 sm:$0xff]   ;;  %v6106_v33 = vld [vmem:[%s6742_s8 + $0xd84] ss:$16 sps:$4 sm:$0xff]  }
 0x216   : > { %3739 = vmatprep.subr.bf16.mxu0 %v6022_v34  ;;  %4067 = vmatprep.subr.bf16.mxu1 %v6025_v26  ;;  %v6109_v34 = vld [vmem:[%s6742_s8 + $0xd8c] ss:$16 sps:$4 sm:$0xff]   ;;  %v6104_v26 = vld [vmem:[%s6742_s8 + $0xd80] ss:$16 sps:$4 sm:$0xff]  }
 0x219   : > { %3740 = vmatpush1.bf16.msra.mxu0 %v6020_v36  ;;  %4068 = vmatpush1.bf16.msra.mxu1 %v6023_v14  ;;  %v6112_v36 = vld [vmem:[%s6742_s8 + $0xda4] ss:$16 sps:$4 sm:$0xff]   ;;  %v6115_v14 = vld [vmem:[%s6742_s8 + $0xdac] ss:$16 sps:$4 sm:$0xff]  }
 0x21a   : > { %3741 = vmatprep.subr.bf16.mxu0 %v6028_v39  ;;  %4069 = vmatprep.subr.bf16.mxu1 %v6031_v40  ;;  %v6110_v39 = vld [vmem:[%s6742_s8 + $0xda0] ss:$16 sps:$4 sm:$0xff]   ;;  %v6113_v40 = vld [vmem:[%s6742_s8 + $0xda8] ss:$16 sps:$4 sm:$0xff]  }
 0x21d   : > { %3742 = vmatpush1.bf16.msra.mxu0 %v6026_v22  ;;  %4070 = vmatpush1.bf16.msra.mxu1 %v6029_v42  ;;  %v6118_v22 = vld [vmem:[%s6742_s8 + $0xdc4] ss:$16 sps:$4 sm:$0xff]   ;;  %v6121_v42 = vld [vmem:[%s6742_s8 + $0xdcc] ss:$16 sps:$4 sm:$0xff]  }
 0x21e   : > { %3752 = vmatprep.subr.bf16.mxu0 %v6034_v43  ;;  %4080 = vmatprep.subr.bf16.mxu1 %v6037_v28  ;;  %v6116_v43 = vld [vmem:[%s6742_s8 + $0xdc0] ss:$16 sps:$4 sm:$0xff]   ;;  %v6119_v28 = vld [vmem:[%s6742_s8 + $0xdc8] ss:$16 sps:$4 sm:$0xff]  }
 0x220   : > { %3744 = vmatmul.mubr.bf16.vlgmr.msra.gmra.mrb[0].mxu0 %v926_v46  ;;  %4072 = vmatmul.mubr.bf16.vlgmr.msra.gmra.mrb[0].mxu1 %v926_v46  ;;  %v6127_v46 = vld [vmem:[%s6742_s8 + $0xdec] ss:$16 sps:$4 sm:$0xff]  }
 0x221   : > { %3753 = vmatpush1.bf16.msra.mxu0 %v6032_v47  ;;  %4081 = vmatpush1.bf16.msra.mxu1 %v6035_v37  ;;  %v6122_v47 = vld [vmem:[%s6742_s8 + $0xde0] ss:$16 sps:$4 sm:$0xff]   ;;  %v6125_v37 = vld [vmem:[%s6742_s8 + $0xde8] ss:$16 sps:$4 sm:$0xff]  }
 0x222   : > { %3754 = vmatprep.subr.bf16.mxu0 %v6040_v48  ;;  %4082 = vmatprep.subr.bf16.mxu1 %v6043_v49  ;;  %v6131_v48 = vld [vmem:[%s6742_s8 + $0xe04] ss:$16 sps:$4 sm:$0xff]   ;;  %v6134_v49 = vld [vmem:[%s6742_s8 + $0xe0c] ss:$16 sps:$4 sm:$0xff]  }
 0x223   : > { %3784 = vmatprep.mubr.bf16.mxu0 %v7236_v51  ;;  %4112 = vmatprep.mubr.bf16.mxu1 %v7236_v51 }
 0x225   : > { %3755 = vmatpush1.bf16.msra.mxu0 %v6038_v38  ;;  %4083 = vmatpush1.bf16.msra.mxu1 %v6041_v52  ;;  %v7302_v38 = vrot.slane %v7221_v41, %v6818_v50  ;;  %v6129_v52 = vld [vmem:[%s6742_s8 + $0xe00] ss:$16 sps:$4 sm:$0xff]   ;;  %v6138_v41 = vld [vmem:[%s6742_s8 + $0xe28] ss:$16 sps:$4 sm:$0xff]  }
 0x226   : > { %3756 = vmatprep.subr.bf16.mxu0 %v6046_v54  ;;  %4084 = vmatprep.subr.bf16.mxu1 %v6049_v55  ;;  %v6132_v54 = vld [vmem:[%s6742_s8 + $0xe08] ss:$16 sps:$4 sm:$0xff]   ;;  %v6137_v55 = vld [vmem:[%s6742_s8 + $0xe24] ss:$16 sps:$4 sm:$0xff]   ;;  %v6135_v50 = vld [vmem:[%s6742_s8 + $0xe20] ss:$16 sps:$4 sm:$0xff]  }
 0x229   : > { %3757 = vmatpush1.bf16.msra.mxu0 %v6044_v56  ;;  %4085 = vmatpush1.bf16.msra.mxu1 %v6047_v57  ;;  %v6140_v56 = vld [vmem:[%s6742_s8 + $0xe2c] ss:$16 sps:$4 sm:$0xff]   ;;  %v929_v57 = vcombine.high %v7236_v51, %v7236_v51  ;;  %v6141_v51 = vld [vmem:[%s6742_s8 + $0xe40] ss:$16 sps:$4 sm:$0xff]  }
 0x22a   : > { %3758 = vmatprep.subr.bf16.mxu0 %v6052_v58  ;;  %4086 = vmatprep.subr.bf16.mxu1 %v6055_v59  ;;  %v6143_v58 = vld [vmem:[%s6742_s8 + $0xe44] ss:$16 sps:$4 sm:$0xff]   ;;  %v6146_v59 = vld [vmem:[%s6742_s8 + $0xe4c] ss:$16 sps:$4 sm:$0xff]  }
 0x22d   : > { %3759 = vmatpush1.bf16.msra.mxu0 %v6050_v60  ;;  %4087 = vmatpush1.bf16.msra.mxu1 %v6053_v61  ;;  %v6144_v60 = vld [vmem:[%s6742_s8 + $0xe48] ss:$16 sps:$4 sm:$0xff]   ;;  %v6149_v61 = vld [vmem:[%s6742_s8 + $0xe64] ss:$16 sps:$4 sm:$0xff]  }
 0x22e   : > { %3760 = vmatprep.subr.bf16.mxu0 %v6058_v62  ;;  %4088 = vmatprep.subr.bf16.mxu1 %v6061_v63  ;;  %v6152_v62 = vld [vmem:[%s6742_s8 + $0xe6c] ss:$16 sps:$4 sm:$0xff]   ;;  %v6147_v63 = vld [vmem:[%s6742_s8 + $0xe60] ss:$16 sps:$4 sm:$0xff]  }
 0x231   : > { %3761 = vmatpush1.bf16.msra.mxu0 %v6056_v0  ;;  %4089 = vmatpush1.bf16.msra.mxu1 %v6059_v1  ;;  %v6150_v0 = vld [vmem:[%s6742_s8 + $0xe68] ss:$16 sps:$4 sm:$0xff]   ;;  %v6155_v1 = vld [vmem:[%s6742_s8 + $0xe84] ss:$16 sps:$4 sm:$0xff]  }
 0x232   : > { %3762 = vmatprep.subr.bf16.mxu0 %v6064_v2  ;;  %4090 = vmatprep.subr.bf16.mxu1 %v6067_v3  ;;  %v6158_v2 = vld [vmem:[%s6742_s8 + $0xe8c] ss:$16 sps:$4 sm:$0xff]   ;;  %v6153_v3 = vld [vmem:[%s6742_s8 + $0xe80] ss:$16 sps:$4 sm:$0xff]  }
 0x235   : > { %3763 = vmatpush1.bf16.msra.mxu0 %v6062_v4  ;;  %4091 = vmatpush1.bf16.msra.mxu1 %v6065_v5  ;;  %v6156_v4 = vld [vmem:[%s6742_s8 + $0xe88] ss:$16 sps:$4 sm:$0xff]   ;;  %v6161_v5 = vld [vmem:[%s6742_s8 + $0xea4] ss:$16 sps:$4 sm:$0xff]  }
 0x236   : > { %3764 = vmatprep.subr.bf16.mxu0 %v6070_v6  ;;  %4092 = vmatprep.subr.bf16.mxu1 %v6073_v7  ;;  %v6164_v6 = vld [vmem:[%s6742_s8 + $0xeac] ss:$16 sps:$4 sm:$0xff]   ;;  %v6159_v7 = vld [vmem:[%s6742_s8 + $0xea0] ss:$16 sps:$4 sm:$0xff]  }
 0x239   : > { %3765 = vmatpush1.bf16.msra.mxu0 %v6068_v8  ;;  %4093 = vmatpush1.bf16.msra.mxu1 %v6071_v9  ;;  %v6162_v8 = vld [vmem:[%s6742_s8 + $0xea8] ss:$16 sps:$4 sm:$0xff]   ;;  %v6167_v9 = vld [vmem:[%s6742_s8 + $0xec4] ss:$16 sps:$4 sm:$0xff]  }
 0x23a   : > { %3766 = vmatprep.subr.bf16.mxu0 %v6076_v10  ;;  %4094 = vmatprep.subr.bf16.mxu1 %v6079_v11  ;;  %v6170_v10 = vld [vmem:[%s6742_s8 + $0xecc] ss:$16 sps:$4 sm:$0xff]   ;;  %v6165_v11 = vld [vmem:[%s6742_s8 + $0xec0] ss:$16 sps:$4 sm:$0xff]  }
 0x23d   : > { %3767 = vmatpush1.bf16.msra.mxu0 %v6074_v12  ;;  %4095 = vmatpush1.bf16.msra.mxu1 %v6077_v13  ;;  %v6168_v12 = vld [vmem:[%s6742_s8 + $0xec8] ss:$16 sps:$4 sm:$0xff]   ;;  %v6173_v13 = vld [vmem:[%s6742_s8 + $0xee4] ss:$16 sps:$4 sm:$0xff]  }
 0x23e   : > { %3768 = vmatprep.subr.bf16.mxu0 %v6082_v15  ;;  %4096 = vmatprep.subr.bf16.mxu1 %v6085_v17  ;;  %v6176_v15 = vld [vmem:[%s6742_s8 + $0xeec] ss:$16 sps:$4 sm:$0xff]   ;;  %v6171_v17 = vld [vmem:[%s6742_s8 + $0xee0] ss:$16 sps:$4 sm:$0xff]  }
 0x241   : > { %3769 = vmatpush1.bf16.msra.mxu0 %v6080_v53  ;;  %4097 = vmatpush1.bf16.msra.mxu1 %v6083_v18  ;;  %v6174_v53 = vld [vmem:[%s6742_s8 + $0xee8] ss:$16 sps:$4 sm:$0xff]   ;;  %v6179_v18 = vld [vmem:[%s6742_s8 + $0xf04] ss:$16 sps:$4 sm:$0xff]  }
 0x242   : > { %3770 = vmatprep.subr.bf16.mxu0 %v6088_v19  ;;  %4098 = vmatprep.subr.bf16.mxu1 %v6091_v20  ;;  %v6182_v19 = vld [vmem:[%s6742_s8 + $0xf0c] ss:$16 sps:$4 sm:$0xff]   ;;  %v6177_v20 = vld [vmem:[%s6742_s8 + $0xf00] ss:$16 sps:$4 sm:$0xff]  }
 0x245   : > { %3771 = vmatpush1.bf16.msra.mxu0 %v6086_v21  ;;  %4099 = vmatpush1.bf16.msra.mxu1 %v6089_v23  ;;  %v6180_v21 = vld [vmem:[%s6742_s8 + $0xf08] ss:$16 sps:$4 sm:$0xff]   ;;  %v6185_v23 = vld [vmem:[%s6742_s8 + $0xf24] ss:$16 sps:$4 sm:$0xff]  }
 0x246   : > { %3772 = vmatprep.subr.bf16.mxu0 %v6094_v24  ;;  %4100 = vmatprep.subr.bf16.mxu1 %v6097_v25  ;;  %v6188_v24 = vld [vmem:[%s6742_s8 + $0xf2c] ss:$16 sps:$4 sm:$0xff]   ;;  %v6183_v25 = vld [vmem:[%s6742_s8 + $0xf20] ss:$16 sps:$4 sm:$0xff]  }
 0x249   : > { %3773 = vmatpush1.bf16.msra.mxu0 %v6092_v27  ;;  %4101 = vmatpush1.bf16.msra.mxu1 %v6095_v29  ;;  %v6186_v27 = vld [vmem:[%s6742_s8 + $0xf28] ss:$16 sps:$4 sm:$0xff]   ;;  %v6191_v29 = vld [vmem:[%s6742_s8 + $0xf44] ss:$16 sps:$4 sm:$0xff]  }
 0x24a   : > { %3774 = vmatprep.subr.bf16.mxu0 %v6100_v30  ;;  %4102 = vmatprep.subr.bf16.mxu1 %v6103_v31  ;;  %v6194_v30 = vld [vmem:[%s6742_s8 + $0xf4c] ss:$16 sps:$4 sm:$0xff]   ;;  %v6189_v31 = vld [vmem:[%s6742_s8 + $0xf40] ss:$16 sps:$4 sm:$0xff]  }
 0x24d   : > { %3775 = vmatpush1.bf16.msra.mxu0 %v6098_v16  ;;  %4103 = vmatpush1.bf16.msra.mxu1 %v6101_v32  ;;  %v6192_v16 = vld [vmem:[%s6742_s8 + $0xf48] ss:$16 sps:$4 sm:$0xff]   ;;  %v6197_v32 = vld [vmem:[%s6742_s8 + $0xf64] ss:$16 sps:$4 sm:$0xff]  }
 0x24e   : > { %3776 = vmatprep.subr.bf16.mxu0 %v6106_v33  ;;  %4104 = vmatprep.subr.bf16.mxu1 %v6109_v34  ;;  %v6200_v33 = vld [vmem:[%s6742_s8 + $0xf6c] ss:$16 sps:$4 sm:$0xff]   ;;  %v6195_v34 = vld [vmem:[%s6742_s8 + $0xf60] ss:$16 sps:$4 sm:$0xff]  }
 0x251   : > { %3777 = vmatpush1.bf16.msra.mxu0 %v6104_v26  ;;  %4105 = vmatpush1.bf16.msra.mxu1 %v6107_v35  ;;  %v6198_v26 = vld [vmem:[%s6742_s8 + $0xf68] ss:$16 sps:$4 sm:$0xff]   ;;  %v6203_v35 = vld [vmem:[%s6742_s8 + $0xf84] ss:$16 sps:$4 sm:$0xff]  }
 0x252   : > { %3778 = vmatprep.subr.bf16.mxu0 %v6112_v36  ;;  %4106 = vmatprep.subr.bf16.mxu1 %v6115_v14  ;;  %v6206_v36 = vld [vmem:[%s6742_s8 + $0xf8c] ss:$16 sps:$4 sm:$0xff]   ;;  %v6201_v14 = vld [vmem:[%s6742_s8 + $0xf80] ss:$16 sps:$4 sm:$0xff]  }
 0x255   : > { %3779 = vmatpush1.bf16.msra.mxu0 %v6110_v39  ;;  %4107 = vmatpush1.bf16.msra.mxu1 %v6113_v40  ;;  %v6204_v39 = vld [vmem:[%s6742_s8 + $0xf88] ss:$16 sps:$4 sm:$0xff]   ;;  %v6209_v40 = vld [vmem:[%s6742_s8 + $0xfa4] ss:$16 sps:$4 sm:$0xff]  }
 0x256   : > { %3780 = vmatprep.subr.bf16.mxu0 %v6118_v22  ;;  %4108 = vmatprep.subr.bf16.mxu1 %v6121_v42  ;;  %v6212_v22 = vld [vmem:[%s6742_s8 + $0xfac] ss:$16 sps:$4 sm:$0xff]   ;;  %v6207_v42 = vld [vmem:[%s6742_s8 + $0xfa0] ss:$16 sps:$4 sm:$0xff]  }
 0x259   : > { %3781 = vmatpush1.bf16.msra.mxu0 %v6116_v43  ;;  %4109 = vmatpush1.bf16.msra.mxu1 %v6119_v28  ;;  %v6210_v43 = vld [vmem:[%s6742_s8 + $0xfa8] ss:$16 sps:$4 sm:$0xff]   ;;  %v6215_v28 = vld [vmem:[%s6742_s8 + $0xfc4] ss:$16 sps:$4 sm:$0xff]  }
 0x25a   : > { %3782 = vmatprep.subr.bf16.mxu0 %v6124_v45  ;;  %4110 = vmatprep.subr.bf16.mxu1 %v6127_v46  ;;  %v6218_v45 = vld [vmem:[%s6742_s8 + $0xfcc] ss:$16 sps:$4 sm:$0xff]   ;;  %v6213_v46 = vld [vmem:[%s6742_s8 + $0xfc0] ss:$16 sps:$4 sm:$0xff]  }
 0x25d   : > { %3783 = vmatpush1.bf16.msra.mxu0 %v6122_v47  ;;  %4111 = vmatpush1.bf16.msra.mxu1 %v6125_v37  ;;  %v6216_v47 = vld [vmem:[%s6742_s8 + $0xfc8] ss:$16 sps:$4 sm:$0xff]   ;;  %v6221_v37 = vld [vmem:[%s6742_s8 + $0xfe4] ss:$16 sps:$4 sm:$0xff]  }
 0x25e   : > { %3793 = vmatprep.subr.bf16.mxu0 %v6131_v48  ;;  %4121 = vmatprep.subr.bf16.mxu1 %v6134_v49  ;;  %v6224_v48 = vld [vmem:[%s6742_s8 + $0xfec] ss:$16 sps:$4 sm:$0xff]   ;;  %v6219_v49 = vld [vmem:[%s6742_s8 + $0xfe0] ss:$16 sps:$4 sm:$0xff]  }
 0x260   : > { %3785 = vmatmul.mubr.bf16.vlgmr.msra.gmra.mrb[0].mxu0 %v7302_v38  ;;  %4113 = vmatmul.mubr.bf16.vlgmr.msra.gmra.mrb[0].mxu1 %v7302_v38 }
 0x261   : > { %3794 = vmatpush1.bf16.msra.mxu0 %v6129_v52  ;;  %4122 = vmatpush1.bf16.msra.mxu1 %v6132_v54  ;;  %v6222_v52 = vld [vmem:[%s6742_s8 + $0xfe8] ss:$16 sps:$4 sm:$0xff]   ;;  %v927_v54 = vcombine.high %v7302_v38, %v7302_v38 }
 0x262   : > { %3795 = vmatprep.subr.bf16.mxu0 %v6137_v55  ;;  %4123 = vmatprep.subr.bf16.mxu1 %v6140_v56  ;;  %v6453_v55 = vmov 1983009808  }
 0x263   : > { %3825 = vmatprep.mubr.bf16.mxu0 %v929_v57  ;;  %4153 = vmatprep.mubr.bf16.mxu1 %v929_v57  ;;  %v4169_v56 = vunpack.c.l.s4 %v6453_v55  ;;  %v4267_v55 = vld [vmem:[%s6763_s30 + $0x130] sm:$0xff] (!%p5134_p4) }
 0x265   : > { %3796 = vmatpush1.bf16.msra.mxu0 %v6135_v50  ;;  %4124 = vmatpush1.bf16.msra.mxu1 %v6138_v41  ;;  %v4170_v57 = vunpack.c.0.s8 %v4169_v56  ;;  %v4268_v56 = vld [vmem:[%s6763_s30 + $0x138] sm:$0xff] (!%p5134_p4) }
 0x266   : > { %3797 = vmatprep.subr.bf16.mxu0 %v6143_v58  ;;  %4125 = vmatprep.subr.bf16.mxu1 %v6146_v59 }
 0x267   : > { %v7373_v58 = vsub.s32 %v4170_v57, %v6808_v44  ;;  %v4253_v57 = vld [vmem:[%s6763_s30 + $0xc0] sm:$0xff] (!%p5134_p4) }
 0x269   : > { %3798 = vmatpush1.bf16.msra.mxu0 %v6141_v51  ;;  %4126 = vmatpush1.bf16.msra.mxu1 %v6144_v60 }
 0x26a   : > { %3799 = vmatprep.subr.bf16.mxu0 %v6149_v61  ;;  %4127 = vmatprep.subr.bf16.mxu1 %v6152_v62 }
 0x26d   : > { %3800 = vmatpush1.bf16.msra.mxu0 %v6147_v63  ;;  %4128 = vmatpush1.bf16.msra.mxu1 %v6150_v0 }
 0x26e   : > { %3801 = vmatprep.subr.bf16.mxu0 %v6155_v1  ;;  %4129 = vmatprep.subr.bf16.mxu1 %v6158_v2 }
 0x271   : > { %3802 = vmatpush1.bf16.msra.mxu0 %v6153_v3  ;;  %4130 = vmatpush1.bf16.msra.mxu1 %v6156_v4  ;;  %v317_v3 = vld [vmem:[#allocation2] sm:$0xff] }
 0x272   : > { %3803 = vmatprep.subr.bf16.mxu0 %v6161_v5  ;;  %4131 = vmatprep.subr.bf16.mxu1 %v6164_v6  ;;  %v4245_v6 = vld [vmem:[%s6763_s30 + $0x80] sm:$0xff] (!%p5134_p4) }
 0x275   : > { %3804 = vmatpush1.bf16.msra.mxu0 %v6159_v7  ;;  %4132 = vmatpush1.bf16.msra.mxu1 %v6162_v8  ;;  %v4246_v7 = vld [vmem:[%s6763_s30 + $0x88] sm:$0xff] (!%p5134_p4)  ;;  %v4277_v8 = vld [vmem:[%s6763_s30 + $0x180] sm:$0xff] (!%p5134_p4) }
 0x276   : > { %3805 = vmatprep.subr.bf16.mxu0 %v6167_v9  ;;  %4133 = vmatprep.subr.bf16.mxu1 %v6170_v10  ;;  %v5211_v9 = vpack.c.bf16 (!%p5134_p4), %v4246_v7, %v4245_v6  ;;  %v4278_v10 = vld [vmem:[%s6763_s30 + $0x188] sm:$0xff] (!%p5134_p4) }
 0x279   : > { %3806 = vmatpush1.bf16.msra.mxu0 %v6165_v11  ;;  %4134 = vmatpush1.bf16.msra.mxu1 %v6168_v12  ;;  %v4229_v11 = vld [vmem:[%s6763_s30] sm:$0xff] (!%p5134_p4)  ;;  %v4230_v12 = vld [vmem:[%s6763_s30 + $0x8] sm:$0xff] (!%p5134_p4) }
 0x27a   : > { %3807 = vmatprep.subr.bf16.mxu0 %v6173_v13  ;;  %4135 = vmatprep.subr.bf16.mxu1 %v6176_v15  ;;  %v5243_v13 = vpack.c.bf16 (!%p5134_p4), %v4278_v10, %v4277_v8  ;;  %v5213_v15 = vpack.c.bf16 (!%p5134_p4), %v4230_v12, %v4229_v11  ;;  %v4240_v10 = vld [vmem:[%s6763_s30 + $0x58] sm:$0xff] (!%p5134_p4)  ;;  %v4271_v11 = vld [vmem:[%s6763_s30 + $0x150] sm:$0xff] (!%p5134_p4) }
 0x27d   : > { %3808 = vmatpush1.bf16.msra.mxu0 %v6171_v17  ;;  %4136 = vmatpush1.bf16.msra.mxu1 %v6174_v53  ;;  %v4261_v17 = vld [vmem:[%s6763_s30 + $0x100] sm:$0xff] (!%p5134_p4)  ;;  %v4262_v53 = vld [vmem:[%s6763_s30 + $0x108] sm:$0xff] (!%p5134_p4) }
 0x27e   : > { %3809 = vmatprep.subr.bf16.mxu0 %v6179_v18  ;;  %4137 = vmatprep.subr.bf16.mxu1 %v6182_v19  ;;  %v4247_v18 = vld [vmem:[%s6763_s30 + $0x90] sm:$0xff] (!%p5134_p4)  ;;  %v5245_v19 = vpack.c.bf16 (!%p5134_p4), %v4262_v53, %v4261_v17  ;;  %v4258_v17 = vld [vmem:[%s6763_s30 + $0xe8] sm:$0xff] (!%p5134_p4)  ;;  %v4195_v53 = vsub.s32 (!%p5134_p4), 0, %v6808_v44 }
 0x281   : > { %3810 = vmatpush1.bf16.msra.mxu0 %v6177_v20  ;;  %4138 = vmatpush1.bf16.msra.mxu1 %v6180_v21  ;;  %v4248_v20 = vld [vmem:[%s6763_s30 + $0x98] sm:$0xff] (!%p5134_p4)  ;;  %v4279_v21 = vld [vmem:[%s6763_s30 + $0x190] sm:$0xff] (!%p5134_p4) }
 0x282   : > { %3811 = vmatprep.subr.bf16.mxu0 %v6185_v23  ;;  %4139 = vmatprep.subr.bf16.mxu1 %v6188_v24  ;;  %v4280_v23 = vld [vmem:[%s6763_s30 + $0x198] sm:$0xff] (!%p5134_p4)  ;;  %v5215_v24 = vpack.c.bf16 (!%p5134_p4), %v4248_v20, %v4247_v18  ;;  %v4199_v18 = vsub.s32 (!%p5134_p4), 1, %v6808_v44  ;;  %v4289_v20 = vld [vmem:[%s6763_s30 + $0x1e0] sm:$0xff] (!%p5134_p4) }
 0x285   : > { %3812 = vmatpush1.bf16.msra.mxu0 %v6183_v25  ;;  %4140 = vmatpush1.bf16.msra.mxu1 %v6186_v27  ;;  %v5247_v25 = vpack.c.bf16 (!%p5134_p4), %v4280_v23, %v4279_v21  ;;  %v4231_v27 = vld [vmem:[%s6763_s30 + $0x10] sm:$0xff] (!%p5134_p4)  ;;  %v4290_v21 = vld [vmem:[%s6763_s30 + $0x1e8] sm:$0xff] (!%p5134_p4)  ;;  %v4207_v23 = vsub.s32 (!%p5134_p4), 3, %v6808_v44 }
 0x286   : > { %3813 = vmatprep.subr.bf16.mxu0 %v6191_v29  ;;  %4141 = vmatprep.subr.bf16.mxu1 %v6194_v30  ;;  %v4232_v29 = vld [vmem:[%s6763_s30 + $0x18] sm:$0xff] (!%p5134_p4)  ;;  %v4263_v30 = vld [vmem:[%s6763_s30 + $0x110] sm:$0xff] (!%p5134_p4) }
 0x289   : > { %3814 = vmatpush1.bf16.msra.mxu0 %v6189_v31  ;;  %4142 = vmatpush1.bf16.msra.mxu1 %v6192_v16  ;;  %v5217_v31 = vpack.c.bf16 (!%p5134_p4), %v4232_v29, %v4231_v27  ;;  %v4264_v16 = vld [vmem:[%s6763_s30 + $0x118] sm:$0xff] (!%p5134_p4) }
 0x28a   : > { %3815 = vmatprep.subr.bf16.mxu0 %v6197_v32  ;;  %4143 = vmatprep.subr.bf16.mxu1 %v6200_v33  ;;  %v4249_v32 = vld [vmem:[%s6763_s30 + $0xa0] sm:$0xff] (!%p5134_p4)  ;;  %v4250_v33 = vld [vmem:[%s6763_s30 + $0xa8] sm:$0xff] (!%p5134_p4) }
 0x28d   : > { %3816 = vmatpush1.bf16.msra.mxu0 %v6195_v34  ;;  %4144 = vmatpush1.bf16.msra.mxu1 %v6198_v26  ;;  %v5249_v34 = vpack.c.bf16 (!%p5134_p4), %v4264_v16, %v4263_v30  ;;  %v5219_v26 = vpack.c.bf16 (!%p5134_p4), %v4250_v33, %v4249_v32  ;;  %v4242_v30 = vld [vmem:[%s6763_s30 + $0x68] sm:$0xff] (!%p5134_p4)  ;;  %v5267_v32 = vpack.c.bf16 (!%p5134_p4), %v4290_v21, %v4289_v20 }
 0x28e   : > { %3817 = vmatprep.subr.bf16.mxu0 %v6203_v35  ;;  %4145 = vmatprep.subr.bf16.mxu1 %v6206_v36  ;;  %v4281_v35 = vld [vmem:[%s6763_s30 + $0x1a0] sm:$0xff] (!%p5134_p4)  ;;  %v4282_v36 = vld [vmem:[%s6763_s30 + $0x1a8] sm:$0xff] (!%p5134_p4) }
 0x28f   : > { %v4191_v16 = vld [vmem:[%s6752_s4] sm:$0xf] (!%p5134_p4) }
 0x290   : > { %v4274_v33 = vld [vmem:[%s6763_s30 + $0x168] sm:$0xff] (!%p5134_p4) }
 0x291   : > { %3818 = vmatpush1.bf16.msra.mxu0 %v6201_v14  ;;  %4146 = vmatpush1.bf16.msra.mxu1 %v6204_v39  ;;  %v4233_v14 = vld [vmem:[%s6763_s30 + $0x20] sm:$0xff] (!%p5134_p4)  ;;  %v5251_v39 = vpack.c.bf16 (!%p5134_p4), %v4282_v36, %v4281_v35  ;;  %v4200_v35 = vrot.slane (!%p5134_p4), %v4191_v16, %v4199_v18 }
 0x292   : > { %3819 = vmatprep.subr.bf16.mxu0 %v6209_v40  ;;  %4147 = vmatprep.subr.bf16.mxu1 %v6212_v22  ;;  %v4234_v40 = vld [vmem:[%s6763_s30 + $0x28] sm:$0xff] (!%p5134_p4)  ;;  %v4265_v22 = vld [vmem:[%s6763_s30 + $0x120] sm:$0xff] (!%p5134_p4) }
 0x295   : > { %3820 = vmatpush1.bf16.msra.mxu0 %v6207_v42  ;;  %4148 = vmatpush1.bf16.msra.mxu1 %v6210_v43  ;;  %v4266_v42 = vld [vmem:[%s6763_s30 + $0x128] sm:$0xff] (!%p5134_p4)  ;;  %v5221_v43 = vpack.c.bf16 (!%p5134_p4), %v4234_v40, %v4233_v14  ;;  %v4291_v14 = vld [vmem:[%s6763_s30 + $0x1f0] sm:$0xff] (!%p5134_p4)  ;;  %v4208_v40 = vrot.slane (!%p5134_p4), %v4191_v16, %v4207_v23 }
 0x296   : > { %3821 = vmatprep.subr.bf16.mxu0 %v6215_v28  ;;  %4149 = vmatprep.subr.bf16.mxu1 %v6218_v45  ;;  %v4251_v28 = vld [vmem:[%s6763_s30 + $0xb0] sm:$0xff] (!%p5134_p4)  ;;  %v4252_v45 = vld [vmem:[%s6763_s30 + $0xb8] sm:$0xff] (!%p5134_p4) }
 0x299   : > { %3822 = vmatpush1.bf16.msra.mxu0 %v6213_v46  ;;  %4150 = vmatpush1.bf16.msra.mxu1 %v6216_v47  ;;  %v4283_v46 = vld [vmem:[%s6763_s30 + $0x1b0] sm:$0xff] (!%p5134_p4)  ;;  %v5253_v47 = vpack.c.bf16 (!%p5134_p4), %v4266_v42, %v4265_v22 }
 0x29a   : > { %3823 = vmatprep.subr.bf16.mxu0 %v6221_v37  ;;  %4151 = vmatprep.subr.bf16.mxu1 %v6224_v48  ;;  %v5223_v37 = vpack.c.bf16 (!%p5134_p4), %v4252_v45, %v4251_v28  ;;  %v4284_v48 = vld [vmem:[%s6763_s30 + $0x1b8] sm:$0xff] (!%p5134_p4)  ;;  %v4243_v45 = vld [vmem:[%s6763_s30 + $0x70] sm:$0xff] (!%p5134_p4) }
 0x29d   : > { %3824 = vmatpush1.bf16.msra.mxu0 %v6219_v49  ;;  %4152 = vmatpush1.bf16.msra.mxu1 %v6222_v52  ;;  %v4235_v49 = vld [vmem:[%s6763_s30 + $0x30] sm:$0xff] (!%p5134_p4)  ;;  %v4236_v52 = vld [vmem:[%s6763_s30 + $0x38] sm:$0xff] (!%p5134_p4) }
 0x29e   : > { %5212 = vmatprep.subr.bf16.mxu0 (!%p5134_p4), %v5211_v9  ;;  %5244 = vmatprep.subr.bf16.mxu1 (!%p5134_p4), %v5243_v13  ;;  %v4239_v9 = vld [vmem:[%s6763_s30 + $0x50] sm:$0xff] (!%p5134_p4)  ;;  %v4272_v13 = vld [vmem:[%s6763_s30 + $0x158] sm:$0xff] (!%p5134_p4) }
 0x29f   : > { %v5265_v27 = vpack.c.bf16 (!%p5134_p4), %v4272_v13, %v4271_v11 }
 0x2a0   : > { %3826 = vmatmul.mubr.bf16.vlgmr.msra.gmra.mrb[0].mxu0 %v927_v54  ;;  %4154 = vmatmul.mubr.bf16.vlgmr.msra.gmra.mrb[0].mxu1 %v927_v54  ;;  %v5255_v54 = vpack.c.bf16 (!%p5134_p4), %v4284_v48, %v4283_v46  ;;  %v4244_v46 = vld [vmem:[%s6763_s30 + $0x78] sm:$0xff] (!%p5134_p4)  ;;  %v4275_v48 = vld [vmem:[%s6763_s30 + $0x170] sm:$0xff] (!%p5134_p4) }
 0x2a1   : > { %5214 = vmatpush3.bf16.msra.mxu0 (!%p5134_p4), %v5213_v15  ;;  %5246 = vmatpush3.bf16.msra.mxu1 (!%p5134_p4), %v5245_v19  ;;  %v4257_v15 = vld [vmem:[%s6763_s30 + $0xe0] sm:$0xff] (!%p5134_p4)  ;;  %v4203_v19 = vsub.s32 (!%p5134_p4), 2, %v6808_v44  ;;  %v4196_v44 = vrot.slane (!%p5134_p4), %v4191_v16, %v4195_v53 }
 0x2a2   : > { %5216 = vmatprep.subr.bf16.mxu0 (!%p5134_p4), %v5215_v24  ;;  %5248 = vmatprep.subr.bf16.mxu1 (!%p5134_p4), %v5247_v25  ;;  %v5233_v24 = vpack.c.bf16 (!%p5134_p4), %v4240_v10, %v4239_v9  ;;  %v4241_v25 = vld [vmem:[%s6763_s30 + $0x60] sm:$0xff] (!%p5134_p4)  ;;  %v5235_v29 = vpack.c.bf16 (!%p5134_p4), %v4258_v17, %v4257_v15 }
 0x2a3   : > { %v4204_v36 = vrot.slane (!%p5134_p4), %v4191_v16, %v4203_v19  ;;  %v5237_v22 = vpack.c.bf16 (!%p5134_p4), %v4242_v30, %v4241_v25  ;;  %v4209_v42 = vcombine.low (!%p5134_p4), %v4196_v44, %v4200_v35 }
 0x2a5   : > { %5218 = vmatpush3.bf16.msra.mxu0 (!%p5134_p4), %v5217_v31  ;;  %5250 = vmatpush3.bf16.msra.mxu1 (!%p5134_p4), %v5249_v34  ;;  %v4273_v31 = vld [vmem:[%s6763_s30 + $0x160] sm:$0xff] (!%p5134_p4)  ;;  %v4259_v34 = vld [vmem:[%s6763_s30 + $0xf0] sm:$0xff] (!%p5134_p4) }
 0x2a6   : > { %5220 = vmatprep.subr.bf16.mxu0 (!%p5134_p4), %v5219_v26  ;;  %5252 = vmatprep.subr.bf16.mxu1 (!%p5134_p4), %v5251_v39  ;;  %v4260_v26 = vld [vmem:[%s6763_s30 + $0xf8] sm:$0xff] (!%p5134_p4) }
 0x2a7   : > { %v4292_v39 = vld [vmem:[%s6763_s30 + $0x1f8] sm:$0xff] (!%p5134_p4)  ;;  %v5239_v28 = vpack.c.bf16 (!%p5134_p4), %v4260_v26, %v4259_v34 }
 0x2a9   : > { %5222 = vmatpush3.bf16.msra.mxu0 (!%p5134_p4), %v5221_v43  ;;  %5254 = vmatpush3.bf16.msra.mxu1 (!%p5134_p4), %v5253_v47  ;;  %v5269_v43 = vpack.c.bf16 (!%p5134_p4), %v4274_v33, %v4273_v31  ;;  %v4210_v47 = vcombine.low (!%p5134_p4), %v4204_v36, %v4208_v40 }
 0x2aa   : > { %5224 = vmatprep.subr.bf16.mxu0 (!%p5134_p4), %v5223_v37  ;;  %5256 = vmatprep.subr.bf16.mxu1 (!%p5134_p4), %v5255_v54  ;;  %v5271_v37 = vpack.c.bf16 (!%p5134_p4), %v4292_v39, %v4291_v14 }
 0x2ab   : > { %v4224_v54 = vrot.slane (!%p5134_p4), %v4210_v47, %v7373_v58 }
 0x373   : > { %v3827_v50 = vpop.f32.mrb[0].mxu0  ;;  %v4155_v41 = vpop.f32.mrb[0].mxu1 }
 0x374   : > { %v3829_v59 = vpop.f32.mrb[1].mxu0  ;;  %v4157_v51 = vpop.f32.mrb[1].mxu1 }
 0x375   : > { %v4166_v60 = vcombine.low %v3827_v50, %v3829_v59  ;;  %v4167_v61 = vcombine.low %v4155_v41, %v4157_v51  ;;  %v3831_v62 = vpop.f32.mrb[2].mxu0  ;;  %v4159_v63 = vpop.f32.mrb[2].mxu1  ;;  %v4254_v50 = vld [vmem:[%s6763_s30 + $0xc8] sm:$0xff] (!%p5134_p4)  ;;  %v4285_v41 = vld [vmem:[%s6763_s30 + $0x1c0] sm:$0xff] (!%p5134_p4)  ;;  %v5225_v51 = vpack.c.bf16 (!%p5134_p4), %v4236_v52, %v4235_v49  ;;  %v4276_v49 = vld [vmem:[%s6763_s30 + $0x178] sm:$0xff] (!%p5134_p4)  ;;  %v4217_v52 = vrot.slane (!%p5134_p4), %v4209_v42, %v7373_v58 }
 0x376   : > { %v3832_v0 = vpop.f32.mrb[3].mxu0  ;;  %v4160_v38 = vpop.f32.mrb[3].mxu1  ;;  %v4286_v59 = vld [vmem:[%s6763_s30 + $0x1c8] sm:$0xff] (!%p5134_p4)  ;;  %v4237_v62 = vld [vmem:[%s6763_s30 + $0x40] sm:$0xff] (!%p5134_p4) }
 0x377   : > { %v4174_v1 = vrot.slane %v4166_v60, %v7373_v58  ;;  %v4181_v2 = vrot.slane %v4167_v61, %v7373_v58  ;;  %4189 = sbr.rel (%p5134_p4) target bundleno = 1130 (0x46a), region = 56  ;;  %v5257_v60 = vpack.c.bf16 (!%p5134_p4), %v4268_v56, %v4267_v55  ;;  %v5227_v61 = vpack.c.bf16 (!%p5134_p4), %v4254_v50, %v4253_v57  ;;  %v4238_v63 = vld [vmem:[%s6763_s30 + $0x48] sm:$0xff] (!%p5134_p4)  ;;  %v4269_v0 = vld [vmem:[%s6763_s30 + $0x140] sm:$0xff] (!%p5134_p4)  ;;  %5226 = vmatpush3.bf16.msra.mxu0 (!%p5134_p4), %v5225_v51 }
 0x378   : > { %v5259_v38 = vpack.c.bf16 (!%p5134_p4), %v4286_v59, %v4285_v41  ;;  %v5229_v6 = vpack.c.bf16 (!%p5134_p4), %v4238_v63, %v4237_v62  ;;  %v5241_v55 = vpack.c.bf16 (!%p5134_p4), %v4244_v46, %v4243_v45  ;;  %v5273_v57 = vpack.c.bf16 (!%p5134_p4), %v4276_v49, %v4275_v48 }
 0x379   : > { %v4182_v4 = vcombine.low %v4174_v1, %v4181_v2  ;;  %v4270_v1 = vld [vmem:[%s6763_s30 + $0x148] sm:$0xff] (!%p5134_p4)  ;;  %v4255_v2 = vld [vmem:[%s6763_s30 + $0xd0] sm:$0xff] (!%p5134_p4)  ;;  %5258 = vmatpush3.bf16.msra.mxu1 (!%p5134_p4), %v5257_v60  ;;  %5228 = vmatprep.subr.bf16.mxu0 (!%p5134_p4), %v5227_v61  ;;  %v4225_v50 = vcombine.low (!%p5134_p4), %v4217_v52, %v4224_v54 }
 0x37a   : > { %v5261_v7 = vpack.c.bf16 (!%p5134_p4), %v4270_v1, %v4269_v0  ;;  %5260 = vmatprep.subr.bf16.mxu1 (!%p5134_p4), %v5259_v38 }
 0x37b   : > { %v4184_v5 = vadd.f32 %v4182_v4, %v317_v3  ;;  %v4256_v3 = vld [vmem:[%s6763_s30 + $0xd8] sm:$0xff] (!%p5134_p4)  ;;  %v4287_v4 = vld [vmem:[%s6763_s30 + $0x1d0] sm:$0xff] (!%p5134_p4)  ;;  %5230 = vmatpush3.bf16.msra.mxu0 (!%p5134_p4), %v5229_v6 }
 0x37c   : > { %v5231_v8 = vpack.c.bf16 (!%p5134_p4), %v4256_v3, %v4255_v2 }
 0x37d   : > { %4185 = vst [vmem:[#allocation2] sm:$0xff] %v4184_v5  ;;  %v4288_v5 = vld [vmem:[%s6763_s30 + $0x1d8] sm:$0xff] (!%p5134_p4)  ;;  %5262 = vmatpush3.bf16.msra.mxu1 (!%p5134_p4), %v5261_v7 }
 0x37e   : > { %v5263_v12 = vpack.c.bf16 %v4288_v5, %v4287_v4  ;;  %5232 = vmatprep.subr.bf16.mxu0 %v5231_v8 }
 0x37f   : > { %5234 = vmatpush3.bf16.msra.mxu0 %v5233_v24 }
 0x380   : > { %5264 = vmatprep.subr.bf16.mxu1 %v5263_v12  ;;  %5236 = vmatprep.subr.bf16.mxu0 %v5235_v29 }
 0x381   : > { %5266 = vmatpush3.bf16.msra.mxu1 %v5265_v27 }
 0x382   : > { %5268 = vmatprep.subr.bf16.mxu1 %v5267_v32 }
 0x383   : > { %5238 = vmatpush3.bf16.msra.mxu0 %v5237_v22 }
 0x384   : > { %v4190_v56 = vld [vmem:[#allocation2] sm:$0xff]  ;;  %5240 = vmatprep.subr.bf16.mxu0 %v5239_v28 }
 0x385   : > { %5270 = vmatpush3.bf16.msra.mxu1 %v5269_v43  ;;  %v4227_v41 = vadd.f32 %v4225_v50, %v4190_v56 }
 0x386   : > { %5272 = vmatprep.subr.bf16.mxu1 %v5271_v37 }
 0x387   : > { %5242 = vmatpush3.bf16.msra.mxu0 %v5241_v55  ;;  %v4228_v59 = vmax.f32 %v4227_v41, 0.0 }
 0x389   : > { %5274 = vmatpush3.bf16.msra.mxu1 %v5273_v57  ;;  %v4301_v51 = vrot.slane %v4228_v59, %v7373_v58  ;;  %v4294_v60 = vcombine.high %v4228_v59, %v4228_v59 }
 0x38b   : > { %v4309_v61 = vcombine.high %v4301_v51, %v4301_v51  ;;  %v4308_v62 = vrot.slane %v4294_v60, %v7373_v58 }
 0x38d   : > { %4379 = vmatprep.mubr.f32.mxu0 %v4309_v61  ;;  %v4310_v63 = vcombine.high %v4308_v62, %v4308_v62 }
 0x38e   : > { %4380 = vmatmul.mubr.f32.vlgmr.msra.gmra.mrb[0].mxu0 %v4301_v51 }
 0x38f   : > { %4449 = vmatprep.mubr.f32.mxu1 %v4310_v63 }
 0x390   : > { %4450 = vmatmul.mubr.f32.vlgmr.msra.gmra.mrb[0].mxu1 %v4308_v62 }
 0x461   : > { %v5173_v0 = vpop.f32.mrb[0].mxu0 }
 0x462   : > { %v5174_v38 = vpop.f32.mrb[1].mxu0 }
 0x463   : > { %v5208_v1 = vpop.f32.mrb[0].mxu1  ;;  %v5175_v2 = vadd.f32 %v5174_v38, %v5173_v0 }
 0x464   : > { %v5209_v3 = vpop.f32.mrb[1].mxu1 }
 0x465   : > { %v5210_v4 = vadd.f32 %v5209_v3, %v5208_v1 }
 0x467   : > { %v4452_v5 = vadd.f32 %v5210_v4, %v5175_v2 }
 0x469   : > { %4456 = vst.msk [vmem:[%s6765_s23] sm:$0x3] %vm4455_vm0, %v4452_v5 }
 0x46a PF: > { %s5136_s8 = sshll.u32 %s6431_s22, 5  ;;  %s7558_s27 = sld [smem:[#allocation19_spill]] }
 0x46b   : > { %s4471_s21 = sshll.u32 %s6765_s23, 4  ;;  %s4458_s10 = scalar_lea.sflag [#allocation5], %s6749_s28  ;;  %s4472_s21 = int_to_ptr.vmem [resolvable:$true] %s4471_s21 }
 0x46c   : > { %s6313_s5 = scalar_lea.vmem %s4472_s21, 32  ;;  %s6454_s30 = smov [#allocation9]  }
 0x46d   : > { %p6314_p12 = scmp.ne.s32.totalorder %s4472_s21, %s6313_s5  ;;  %s6317_s11 = sshll.u32 %s6454_s30, 4  ;;  %s6318_s11 = int_to_ptr.vmem [resolvable:$false] %s6317_s11 }
 0x46e   : > { %s6319_s18 = scalar_lea.vmem %s6318_s11, 64  ;;  %p6320_p13 = scmp.lt.s32.totalorder %s4472_s21, %s6318_s11 }
 0x46f   : > { %p6315_p3 = pnand %p6314_p12, %p6688_p5  ;;  %p6321_p0 = scmp.lt.s32.totalorder %s6319_s18, %s6313_s5 }
 0x470   : > { %s7456_s26 = scalar_lea.hbm %s7558_s27, %s5136_s8 }
 0x471   : > { %p6316_p10 = pneg %p6315_p3  ;;  %p6322_p8 = por %p6321_p0, %p6320_p13 }
 0x473   : > { %p6323_p11 = pnand %p6322_p8, %p6316_p10 }
 0x475   : > { %6326 = shalt.err (!%p6323_p11)
}
 0x476   : > { %s6327_s22 = scalar_lea.hbm %s7456_s26, 32  ;;  %s6331_s7 = scalar_lea.hbm %s7558_s27, 64 }
 0x477   : > { %p6328_p2 = scmp.ne.s32.totalorder %s7456_s26, %s6327_s22  ;;  %p6332_p1 = scmp.lt.u32.totalorder %s7456_s26, %s7558_s27 }
 0x478   : > { %p6333_p7 = scmp.lt.u32.totalorder %s6331_s7, %s6327_s22  ;;  %p6335_p12 = scmp.lt.u32.totalorder %s6327_s22, %s7456_s26 }
 0x479   : > { %p6329_p9 = pnand %p6328_p2, %p6688_p5 }
 0x47a   : > { %p6334_p4 = por %p6333_p7, %p6332_p1 }
 0x47b   : > { %p6330_p6 = pneg %p6329_p9 }
 0x47c   : > { %p6336_p3 = por %p6335_p12, %p6334_p4 }
 0x47e   : > { %p6337_p10 = pnand %p6336_p3, %p6330_p6 }
 0x480   : > { %6340 = shalt.err (!%p6337_p10)
}
 0x481   : > { %5339 = dma.vmem_to_hbm [thread:$0]  (%p6688_p5), %s4472_s21, 32, %s7456_s26, %s4458_s10  }
 0x482 PF: > { %p5359_p13 = scmp.ge.s32.totalorder %s6443_s25, 2  ;;  %s4483_s8 = sand.u32 1, %s6403_s15  }
 0x483   : > { %p7559_p0 = scmp.ne.s32.totalorder %s7541_s13, 0  ;;  %s4484_s29 = scalar_lea.sflag [#allocation5], %s4483_s8 }
 0x485   : > { %p5353_p8 = pnand %p5359_p13, %p7559_p0 }
 0x487   : > { %6398 = dma.done.wait (!%p5353_p8), %s4484_s29, 32  }
 0x488   : > { %6400 = vsyncadd (!%p5353_p8), %s4484_s29, 4294967264  ;;  %s21_s25 = sadd.s32 1, %s6443_s25   ;;  %s7560_s21 = sld [smem:[#allocation15_spill]] }
 0x489   : > { %p18_p11 = scmp.ge.s32.totalorder %s21_s25, 10   ;;  %s7561_s23 = sld [smem:[#allocation16_spill]] }
 0x48a   : > { %s7562_s1 = sld [smem:[#allocation17_spill]]  ;;  %s7563_s15 = smov %s6407_s16 }
 0x48b   : > { %s7564_s16 = smov %s6411_s17  ;;  %s7565_s17 = smov %s6656_s12 }
 0x48c   : > { %s7566_s18 = smov %s6419_s19  ;;  %s7567_s19 = smov %s6423_s20 }
 0x48d   : > { %s7568_s20 = smov %s6565_s14  ;;  %s7569_s22 = smov %s6439_s24 }
 0x48e   :  { %20 = sbr.rel (!%p18_p11) target bundleno = 13 (0xd), region = 109 }
 0x490   : > { %s7570_s24 = smov %s7562_s1 }
 0x495   :  { %4489 = vsyncpa [#allocation4], 1 }
 0x496   :  { %4491 = vsyncpa [#allocation4 + $0x1], 1 }
 0x497   :  { %4492 = vsyncpa [#allocation7], 1 }
 0x498   :  { %4494 = vsyncpa [#allocation7 + $0x1], 1 }
 0x499   :  { %4495 = vsyncpa [#allocation5], 1 }
 0x49a   :  { %4497 = vsyncpa [#allocation5 + $0x1], 1 }

</bundles_post_ra>
